<compile_context>
chip_gen: v6e
topology: v6e:2x2x1
jax: 0.10.0
libtpu: 0.0.40
codegen_flags: <defaults>
</compile_context>

<pallas_src>
import functools

import jax
import jax.numpy as jnp
import numpy as np
from jax.experimental import pallas as pl
from jax.experimental.pallas import tpu as pltpu


def _bigru_chunk_kernel(
    x_f_ref, x_b_ref,
    wih_f_ref, wih_b_ref, bih_f_ref, bih_b_ref,
    whh_f_ref, whh_b_ref, bhhn_f_ref, bhhn_b_ref,
    h0_ref,
    out_f_ref, out_b_ref,
    gi_f_scr, gi_b_scr, h_scr,
    *, T, Tc, Bp, H, Nc, clip_val, mask_time):
  """One time-chunk of a fused bidirectional GRU.

  Per grid iteration i:
    forward  direction consumes time chunk i        (local steps 0..Tc-1)
    backward direction consumes time chunk Nc-1-i   (local steps Tc-1..0)

  x_f_ref / x_b_ref : (Tc*Bp, I)   flattened input chunks (fwd / bwd order)
  wih_*             : (I, 3H)      W_ih^T, gate order r,z,n
  bih_*             : (1, 3H)      b_ih with b_hh[r,z] folded in
  whh_*             : (H, 3H)      W_hh^T
  bhhn_*            : (1, H)       b_hh n-gate part (stays inside r*(...))
  h0_ref            : (2, Bp, H)   initial [h_f, h_b]
  out_f/out_b       : (Tc, Bp, H)  clamped per-direction outputs
  gi_*_scr          : (Tc*Bp, 3H)  per-chunk hoisted input projection
  h_scr             : (2, Bp, H)   hidden state carried across chunks
  """
  i = pl.program_id(0)

  # Initialize the cross-chunk hidden state once.
  @pl.when(i == 0)
  def _():
    h_scr[...] = h0_ref[...]

  # Hoisted per-chunk input projection, one MXU matmul per direction.
  gi_f_scr[...] = (
      jnp.dot(x_f_ref[...], wih_f_ref[...], preferred_element_type=jnp.float32)
      + bih_f_ref[...])
  gi_b_scr[...] = (
      jnp.dot(x_b_ref[...], wih_b_ref[...], preferred_element_type=jnp.float32)
      + bih_b_ref[...])

  # Loop-invariant operands loaded / broadcast once (outside the step loop).
  whh_f = whh_f_ref[...]
  whh_b = whh_b_ref[...]
  bhhn_f = jnp.broadcast_to(bhhn_f_ref[...], (Bp, H))
  bhhn_b = jnp.broadcast_to(bhhn_b_ref[...], (Bp, H))

  def step(s, carry):
    hf, hb = carry                                   # hidden state in vregs

    fro = pl.multiple_of(s * Bp, 8)                  # fwd local step s
    bro = pl.multiple_of((Tc - 1 - s) * Bp, 8)       # bwd local step Tc-1-s
    gif = gi_f_scr[pl.ds(fro, Bp), :]                # (Bp, 3H), lane offset 0
    gib = gi_b_scr[pl.ds(bro, Bp), :]                # (Bp, 3H), lane offset 0

    # Per-direction hidden matmuls (no zero-padded block-diagonal operand).
    ghf = jnp.dot(hf, whh_f, preferred_element_type=jnp.float32)
    ghb = jnp.dot(hb, whh_b, preferred_element_type=jnp.float32)

    # forward gates
    rf = jax.nn.sigmoid(gif[:, 0:H] + ghf[:, 0:H])
    zf = jax.nn.sigmoid(gif[:, H:2 * H] + ghf[:, H:2 * H])
    nf = jnp.tanh(gif[:, 2 * H:3 * H] + rf * (ghf[:, 2 * H:3 * H] + bhhn_f))
    hf_new = (1.0 - zf) * nf + zf * hf
    # backward gates
    rb = jax.nn.sigmoid(gib[:, 0:H] + ghb[:, 0:H])
    zb = jax.nn.sigmoid(gib[:, H:2 * H] + ghb[:, H:2 * H])
    nb = jnp.tanh(gib[:, 2 * H:3 * H] + rb * (ghb[:, 2 * H:3 * H] + bhhn_b))
    hb_new = (1.0 - zb) * nb + zb * hb

    if mask_time:
      # Only the backward direction meets the zero time-padding BEFORE its
      # real steps (it starts at the padded tail); freeze its state there.
      # Forward only hits padding after its last real step -> harmless.
      tb = (Nc - 1 - i) * Tc + (Tc - 1 - s)
      hb_new = jnp.where(tb < T, hb_new, hb)

    # Clamped outputs; each direction writes its own lane-0-aligned buffer.
    out_f_ref[s, :, :] = jnp.clip(hf_new, -clip_val, clip_val)
    out_b_ref[Tc - 1 - s, :, :] = jnp.clip(hb_new, -clip_val, clip_val)
    return hf_new, hb_new

  hf_fin, hb_fin = jax.lax.fori_loop(
      0, Tc, step, (h_scr[0], h_scr[1]), unroll=min(4, Tc))

  # Persist hidden state for the next chunk.
  h_scr[0] = hf_fin
  h_scr[1] = hb_fin


def calcium_encoder_forward(x, h0, params, clip_val=5.0, *, time_chunk=None,
                            matmul_dtype=jnp.float32):
  """Pallas implementation of Calcium_Encoder.forward.

  x:  (T, B, I) float32     (seq-first, matching nn.GRU default)
  h0: (2, B, H) float32     [forward, backward] initial hidden states
  returns: (T, B, 2H) float32, clamped to [-clip_val, clip_val]
  """
  T, B, I = x.shape
  H = h0.shape[-1]
  (w_ih_f, w_hh_f, b_ih_f, b_hh_f,
   w_ih_b, w_hh_b, b_ih_b, b_hh_b) = params

  # --- Layout prep (glue only, no hoisted compute). ---
  itemsize_x = np.dtype(matmul_dtype).itemsize
  sub = 8 * (4 // itemsize_x)                 # 8 for f32, 16 for bf16 packing
  Bp = ((max(B, 1) + sub - 1) // sub) * sub

  if time_chunk is None:
    time_chunk = min(T, 32)
  Tc = max(1, min(int(time_chunk), T))
  Nc = -(-T // Tc)                            # cdiv
  Tp = Nc * Tc
  mask_time = (Tp != T)

  xp = jnp.pad(x, ((0, Tp - T), (0, Bp - B), (0, 0)))
  x2d = xp.reshape(Tp * Bp, I).astype(matmul_dtype)
  h0p = jnp.pad(h0, ((0, 0), (0, Bp - B), (0, 0))).astype(jnp.float32)

  def prep_dir(w_ih, w_hh, b_ih, b_hh):
    wih_t = w_ih.T.astype(matmul_dtype)                       # (I, 3H)
    whh_t = w_hh.T.astype(jnp.float32)                        # (H, 3H)
    # Fold the r/z parts of b_hh into b_ih (exact); keep n-gate b_hh separate.
    bih = jnp.concatenate(
        [b_ih[:2 * H] + b_hh[:2 * H], b_ih[2 * H:]]).reshape(1, 3 * H)
    bhhn = b_hh[2 * H:].reshape(1, H)
    return wih_t, whh_t, bih.astype(jnp.float32), bhhn.astype(jnp.float32)

  wih_f_t, whh_f_t, bih_f, bhhn_f = prep_dir(w_ih_f, w_hh_f, b_ih_f, b_hh_f)
  wih_b_t, whh_b_t, bih_b, bhhn_b = prep_dir(w_ih_b, w_hh_b, b_ih_b, b_hh_b)

  kernel = functools.partial(
      _bigru_chunk_kernel, T=T, Tc=Tc, Bp=Bp, H=H, Nc=Nc,
      clip_val=float(clip_val), mask_time=mask_time)

  rows = Tc * Bp
  x_f_spec = pl.BlockSpec((rows, I), lambda i: (i, 0))
  x_b_spec = pl.BlockSpec((rows, I), lambda i: (Nc - 1 - i, 0))
  const2 = lambda shape: pl.BlockSpec(shape, lambda i: (0, 0))
  const3 = lambda shape: pl.BlockSpec(shape, lambda i: (0, 0, 0))
  out_f_spec = pl.BlockSpec((Tc, Bp, H), lambda i: (i, 0, 0))
  out_b_spec = pl.BlockSpec((Tc, Bp, H), lambda i: (Nc - 1 - i, 0, 0))

  # VMEM budget (double-buffered blocks + scratches) with headroom.
  blk_x = rows * I * itemsize_x
  blk_out = Tc * Bp * H * 4
  w_bytes = 2 * (I * 3 * H * itemsize_x + H * 3 * H * 4 + 3 * H * 4 + H * 4)
  h0_bytes = 2 * Bp * H * 4
  scr_bytes = 2 * rows * 3 * H * 4 + 2 * Bp * H * 4
  est = 2 * (2 * blk_x + w_bytes + h0_bytes + 2 * blk_out) + scr_bytes
  vmem_limit = int(min(64 * 1024 * 1024, est + (8 << 20)))

  out_f, out_b = pl.pallas_call(
      kernel,
      out_shape=(jax.ShapeDtypeStruct((Tp, Bp, H), jnp.float32),
                 jax.ShapeDtypeStruct((Tp, Bp, H), jnp.float32)),
      grid_spec=pltpu.PrefetchScalarGridSpec(
          num_scalar_prefetch=0,
          grid=(Nc,),                       # time chunks, serial recurrence
          in_specs=[
              x_f_spec, x_b_spec,
              const2((I, 3 * H)), const2((I, 3 * H)),
              const2((1, 3 * H)), const2((1, 3 * H)),
              const2((H, 3 * H)), const2((H, 3 * H)),
              const2((1, H)), const2((1, H)),
              const3((2, Bp, H)),
          ],
          out_specs=[out_f_spec, out_b_spec],
          scratch_shapes=[
              pltpu.VMEM((rows, 3 * H), jnp.float32),   # gi forward (chunk)
              pltpu.VMEM((rows, 3 * H), jnp.float32),   # gi backward (chunk)
              pltpu.VMEM((2, Bp, H), jnp.float32),      # cross-chunk hidden
          ]),
      compiler_params=pltpu.CompilerParams(
          dimension_semantics=("arbitrary",),
          vmem_limit_bytes=vmem_limit),
  )(x2d, x2d,
    wih_f_t, wih_b_t, bih_f, bih_b,
    whh_f_t, whh_b_t, bhhn_f, bhhn_b,
    h0p)

  # Drop time/batch padding; merge the two lane-dense direction buffers.
  return jnp.concatenate([out_f[:T, :B, :], out_b[:T, :B, :]], axis=-1)


def _reference_bigru(x, h0, params, clip_val=5.0):
  """Pure-JAX reference (lax.scan) for correctness checking."""
  (w_ih_f, w_hh_f, b_ih_f, b_hh_f,
   w_ih_b, w_hh_b, b_ih_b, b_hh_b) = params
  H = h0.shape[-1]

  def cell(x_t, h, w_ih, w_hh, b_ih, b_hh):
    gi = x_t @ w_ih.T + b_ih
    gh = h @ w_hh.T + b_hh
    r = jax.nn.sigmoid(gi[:, :H] + gh[:, :H])
    z = jax.nn.sigmoid(gi[:, H:2 * H] + gh[:, H:2 * H])
    n = jnp.tanh(gi[:, 2 * H:] + r * gh[:, 2 * H:])
    return (1.0 - z) * n + z * h

  def step_f(h, x_t):
    h = cell(x_t, h, w_ih_f, w_hh_f, b_ih_f, b_hh_f)
    return h, h

  def step_b(h, x_t):
    h = cell(x_t, h, w_ih_b, w_hh_b, b_ih_b, b_hh_b)
    return h, h

  _, out_f = jax.lax.scan(step_f, h0[0], x)
  _, out_b = jax.lax.scan(step_b, h0[1], x[::-1])
  out = jnp.concatenate([out_f, out_b[::-1]], axis=-1)
  return jnp.clip(out, -clip_val, clip_val)


def init_params(key, input_size, encoder_size):
  """Deterministic parameter init, same shapes/uniform range as nn.GRU."""
  H, I = encoder_size, input_size
  bound = 1.0 / jnp.sqrt(jnp.float32(H))
  keys = jax.random.split(key, 8)
  shapes = [(3 * H, I), (3 * H, H), (3 * H,), (3 * H,),   # forward dir
            (3 * H, I), (3 * H, H), (3 * H,), (3 * H,)]   # backward dir
  return tuple(
      jax.random.uniform(k, s, jnp.float32, -bound, bound)
      for k, s in zip(keys, shapes))


if __name__ == "__main__":
  clip_val = 5.0
  root = jax.random.PRNGKey(0)
  k_x, k_h, k_p = jax.random.split(root, 3)

  # Test 1: f32, T divisible by the time chunk (2 chunks of 4).
  T, B, I, H = 8, 2, 16, 32
  x = jax.random.normal(k_x, (T, B, I), jnp.float32)
  h0 = jax.random.normal(k_h, (2, B, H), jnp.float32)
  params = init_params(k_p, I, H)

  out = calcium_encoder_forward(x, h0, params, clip_val, time_chunk=4)
  out = jax.block_until_ready(out)
  ref = _reference_bigru(x, h0, params, clip_val)
  assert out.shape == (T, B, 2 * H)
  assert jnp.allclose(out, ref, atol=1e-4, rtol=1e-4), "f32 mismatch"

  # Test 2: f32, T NOT divisible by the chunk (exercises padded-time masking).
  T2 = 7
  x2 = x[:T2]
  out2 = calcium_encoder_forward(x2, h0, params, clip_val, time_chunk=4)
  out2 = jax.block_until_ready(out2)
  ref2 = _reference_bigru(x2, h0, params, clip_val)
  assert out2.shape == (T2, B, 2 * H)
  assert jnp.allclose(out2, ref2, atol=1e-4, rtol=1e-4), "masked-T mismatch"

  # Test 3: bf16 input-projection path (throughput / footprint option).
  out3 = calcium_encoder_forward(x, h0, params, clip_val, time_chunk=4,
                                 matmul_dtype=jnp.bfloat16)
  out3 = jax.block_until_ready(out3)
  assert jnp.allclose(out3, ref, atol=1e-1, rtol=1e-1), "bf16 mismatch"

  print("KERNEL_OK")
</pallas_src>

<mosaic_0001>
module attributes {stable_mosaic.version = 11 : i64} {
  func.func @_bigru_chunk_kernel(%arg0: i32, %arg1: memref<32x16xf32, #tpu.memory_space<vmem>>, %arg2: memref<32x16xf32, #tpu.memory_space<vmem>>, %arg3: memref<16x96xf32, #tpu.memory_space<vmem>>, %arg4: memref<16x96xf32, #tpu.memory_space<vmem>>, %arg5: memref<1x96xf32, #tpu.memory_space<vmem>>, %arg6: memref<1x96xf32, #tpu.memory_space<vmem>>, %arg7: memref<32x96xf32, #tpu.memory_space<vmem>>, %arg8: memref<32x96xf32, #tpu.memory_space<vmem>>, %arg9: memref<1x32xf32, #tpu.memory_space<vmem>>, %arg10: memref<1x32xf32, #tpu.memory_space<vmem>>, %arg11: memref<2x8x32xf32, #tpu.memory_space<vmem>>, %arg12: memref<4x8x32xf32, #tpu.memory_space<vmem>>, %arg13: memref<4x8x32xf32, #tpu.memory_space<vmem>>, %arg14: memref<32x96xf32, #tpu.memory_space<vmem>>, %arg15: memref<32x96xf32, #tpu.memory_space<vmem>>, %arg16: memref<2x8x32xf32, #tpu.memory_space<vmem>>) attributes {dimension_semantics = [#tpu.dimension_semantics<arbitrary>], iteration_bounds = array<i64: 2>, scalar_prefetch = 0 : i64, scratch_operands = 3 : i64, tpu.core_type = #tpu.core_type<tc>, window_params = [{transform_indices = @transform_0, window_bounds = array<i64: 32, 16>}, {transform_indices = @transform_1, window_bounds = array<i64: 32, 16>}, {pipeline_mode = #tpu.pipeline_mode<synchronous>, transform_indices = @transform_2, window_bounds = array<i64: 16, 96>}, {pipeline_mode = #tpu.pipeline_mode<synchronous>, transform_indices = @transform_3, window_bounds = array<i64: 16, 96>}, {pipeline_mode = #tpu.pipeline_mode<synchronous>, transform_indices = @transform_4, window_bounds = array<i64: 1, 96>}, {pipeline_mode = #tpu.pipeline_mode<synchronous>, transform_indices = @transform_5, window_bounds = array<i64: 1, 96>}, {pipeline_mode = #tpu.pipeline_mode<synchronous>, transform_indices = @transform_6, window_bounds = array<i64: 32, 96>}, {pipeline_mode = #tpu.pipeline_mode<synchronous>, transform_indices = @transform_7, window_bounds = array<i64: 32, 96>}, {pipeline_mode = #tpu.pipeline_mode<synchronous>, transform_indices = @transform_8, window_bounds = array<i64: 1, 32>}, {pipeline_mode = #tpu.pipeline_mode<synchronous>, transform_indices = @transform_9, window_bounds = array<i64: 1, 32>}, {pipeline_mode = #tpu.pipeline_mode<synchronous>, transform_indices = @transform_10, window_bounds = array<i64: 2, 8, 32>}, {transform_indices = @transform_11, window_bounds = array<i64: 4, 8, 32>}, {transform_indices = @transform_12, window_bounds = array<i64: 4, 8, 32>}]} {
    %c0_i32 = arith.constant 0 : i32
    %0 = arith.cmpi eq, %arg0, %c0_i32 : i32
    %1 = arith.extui %0 : i1 to i32
    %c0_i32_0 = arith.constant 0 : i32
    %2 = arith.cmpi ne, %1, %c0_i32_0 : i32
    scf.if %2 {
      %c0_124 = arith.constant 0 : index
      %c0_125 = arith.constant 0 : index
      %c0_126 = arith.constant 0 : index
      %363 = vector.load %arg11[%c0_124, %c0_125, %c0_126] : memref<2x8x32xf32, #tpu.memory_space<vmem>>, vector<2x8x32xf32>
      %c0_127 = arith.constant 0 : index
      %c0_128 = arith.constant 0 : index
      %c0_129 = arith.constant 0 : index
      %364 = vector.load %arg16[%c0_127, %c0_128, %c0_129] : memref<2x8x32xf32, #tpu.memory_space<vmem>>, vector<2x8x32xf32>
      tpu.vector_store %arg16[%c0_127, %c0_128, %c0_129], %363 {strides = array<i32>} : memref<2x8x32xf32, #tpu.memory_space<vmem>>, vector<2x8x32xf32>,
    } else {
    }
    %c0 = arith.constant 0 : index
    %c0_1 = arith.constant 0 : index
    %3 = vector.load %arg1[%c0, %c0_1] : memref<32x16xf32, #tpu.memory_space<vmem>>, vector<32x16xf32>
    %c0_2 = arith.constant 0 : index
    %c0_3 = arith.constant 0 : index
    %4 = vector.load %arg3[%c0_2, %c0_3] : memref<16x96xf32, #tpu.memory_space<vmem>>, vector<16x96xf32>
    %cst = arith.constant dense<0.000000e+00> : vector<32x96xf32>
    %5 = tpu.matmul %3, %4, %cst {dimension_numbers = #tpu.dot_dimension_numbers<[1], [0], [0], [1], [0, 0, 1, 1], [], []>} : vector<32x16xf32>, vector<16x96xf32>, vector<32x96xf32> -> vector<32x96xf32>
    %c0_4 = arith.constant 0 : index
    %c0_5 = arith.constant 0 : index
    %6 = vector.load %arg5[%c0_4, %c0_5] : memref<1x96xf32, #tpu.memory_space<vmem>>, vector<1x96xf32>
    %7 = vector.broadcast %6 : vector<1x96xf32> to vector<32x96xf32>
    %8 = arith.addf %5, %7 : vector<32x96xf32>
    %c0_6 = arith.constant 0 : index
    %c0_7 = arith.constant 0 : index
    %9 = vector.load %arg14[%c0_6, %c0_7] : memref<32x96xf32, #tpu.memory_space<vmem>>, vector<32x96xf32>
    tpu.vector_store %arg14[%c0_6, %c0_7], %8 {strides = array<i32>} : memref<32x96xf32, #tpu.memory_space<vmem>>, vector<32x96xf32>,
    %c0_8 = arith.constant 0 : index
    %c0_9 = arith.constant 0 : index
    %10 = vector.load %arg2[%c0_8, %c0_9] : memref<32x16xf32, #tpu.memory_space<vmem>>, vector<32x16xf32>
    %c0_10 = arith.constant 0 : index
    %c0_11 = arith.constant 0 : index
    %11 = vector.load %arg4[%c0_10, %c0_11] : memref<16x96xf32, #tpu.memory_space<vmem>>, vector<16x96xf32>
    %cst_12 = arith.constant dense<0.000000e+00> : vector<32x96xf32>
    %12 = tpu.matmul %10, %11, %cst_12 {dimension_numbers = #tpu.dot_dimension_numbers<[1], [0], [0], [1], [0, 0, 1, 1], [], []>} : vector<32x16xf32>, vector<16x96xf32>, vector<32x96xf32> -> vector<32x96xf32>
    %c0_13 = arith.constant 0 : index
    %c0_14 = arith.constant 0 : index
    %13 = vector.load %arg6[%c0_13, %c0_14] : memref<1x96xf32, #tpu.memory_space<vmem>>, vector<1x96xf32>
    %14 = vector.broadcast %13 : vector<1x96xf32> to vector<32x96xf32>
    %15 = arith.addf %12, %14 : vector<32x96xf32>
    %c0_15 = arith.constant 0 : index
    %c0_16 = arith.constant 0 : index
    %16 = vector.load %arg15[%c0_15, %c0_16] : memref<32x96xf32, #tpu.memory_space<vmem>>, vector<32x96xf32>
    tpu.vector_store %arg15[%c0_15, %c0_16], %15 {strides = array<i32>} : memref<32x96xf32, #tpu.memory_space<vmem>>, vector<32x96xf32>,
    %c0_17 = arith.constant 0 : index
    %c0_18 = arith.constant 0 : index
    %17 = vector.load %arg7[%c0_17, %c0_18] : memref<32x96xf32, #tpu.memory_space<vmem>>, vector<32x96xf32>
    %c0_19 = arith.constant 0 : index
    %c0_20 = arith.constant 0 : index
    %18 = vector.load %arg8[%c0_19, %c0_20] : memref<32x96xf32, #tpu.memory_space<vmem>>, vector<32x96xf32>
    %c0_21 = arith.constant 0 : index
    %c0_22 = arith.constant 0 : index
    %19 = vector.load %arg9[%c0_21, %c0_22] : memref<1x32xf32, #tpu.memory_space<vmem>>, vector<1x32xf32>
    %20 = vector.shape_cast %19 : vector<1x32xf32> to vector<1x32xf32>
    %21 = vector.broadcast %20 : vector<1x32xf32> to vector<8x32xf32>
    %c0_23 = arith.constant 0 : index
    %c0_24 = arith.constant 0 : index
    %22 = vector.load %arg10[%c0_23, %c0_24] : memref<1x32xf32, #tpu.memory_space<vmem>>, vector<1x32xf32>
    %23 = vector.shape_cast %22 : vector<1x32xf32> to vector<1x32xf32>
    %24 = vector.broadcast %23 : vector<1x32xf32> to vector<8x32xf32>
    %c0_25 = arith.constant 0 : index
    %c0_26 = arith.constant 0 : index
    %c0_27 = arith.constant 0 : index
    %25 = vector.load %arg16[%c0_25, %c0_26, %c0_27] : memref<2x8x32xf32, #tpu.memory_space<vmem>>, vector<1x8x32xf32>
    %26 = vector.shape_cast %25 : vector<1x8x32xf32> to vector<8x32xf32>
    %c1 = arith.constant 1 : index
    %c0_28 = arith.constant 0 : index
    %c0_29 = arith.constant 0 : index
    %27 = vector.load %arg16[%c1, %c0_28, %c0_29] : memref<2x8x32xf32, #tpu.memory_space<vmem>>, vector<1x8x32xf32>
    %28 = vector.shape_cast %27 : vector<1x8x32xf32> to vector<8x32xf32>
    %c0_i32_30 = arith.constant 0 : i32
    %c8_i32 = arith.constant 8 : i32
    %29 = arith.muli %c0_i32_30, %c8_i32 : i32
    %30 = tpu.assume_multiple %29, 8 : i32
    %c3_i32 = arith.constant 3 : i32
    %31 = arith.subi %c3_i32, %c0_i32_30 : i32
    %c8_i32_31 = arith.constant 8 : i32
    %32 = arith.muli %31, %c8_i32_31 : i32
    %33 = tpu.assume_multiple %32, 8 : i32
    %34 = arith.index_cast %30 : i32 to index
    %c0_32 = arith.constant 0 : index
    %35 = vector.load %arg14[%34, %c0_32] : memref<32x96xf32, #tpu.memory_space<vmem>>, vector<8x96xf32>
    %36 = arith.index_cast %33 : i32 to index
    %c0_33 = arith.constant 0 : index
    %37 = vector.load %arg15[%36, %c0_33] : memref<32x96xf32, #tpu.memory_space<vmem>>, vector<8x96xf32>
    %cst_34 = arith.constant dense<0.000000e+00> : vector<8x96xf32>
    %38 = tpu.matmul %26, %17, %cst_34 {dimension_numbers = #tpu.dot_dimension_numbers<[1], [0], [0], [1], [0, 0, 1, 1], [], []>} : vector<8x32xf32>, vector<32x96xf32>, vector<8x96xf32> -> vector<8x96xf32>
    %cst_35 = arith.constant dense<0.000000e+00> : vector<8x96xf32>
    %39 = tpu.matmul %28, %18, %cst_35 {dimension_numbers = #tpu.dot_dimension_numbers<[1], [0], [0], [1], [0, 0, 1, 1], [], []>} : vector<8x32xf32>, vector<32x96xf32>, vector<8x96xf32> -> vector<8x96xf32>
    %40 = vector.extract_strided_slice %35 {offsets = [0, 0], sizes = [8, 32], strides = [1, 1]} : vector<8x96xf32> to vector<8x32xf32>
    %41 = vector.extract_strided_slice %38 {offsets = [0, 0], sizes = [8, 32], strides = [1, 1]} : vector<8x96xf32> to vector<8x32xf32>
    %42 = arith.addf %40, %41 : vector<8x32xf32>
    %43 = arith.negf %42 : vector<8x32xf32>
    %44 = math.exp %43 : vector<8x32xf32>
    %cst_36 = arith.constant 1.000000e+00 : f32
    %45 = vector.broadcast %cst_36 : f32 to vector<8x32xf32>
    %46 = arith.addf %45, %44 : vector<8x32xf32>
    %47 = arith.divf %45, %46 : vector<8x32xf32>
    %48 = vector.extract_strided_slice %35 {offsets = [0, 32], sizes = [8, 32], strides = [1, 1]} : vector<8x96xf32> to vector<8x32xf32>
    %49 = vector.extract_strided_slice %38 {offsets = [0, 32], sizes = [8, 32], strides = [1, 1]} : vector<8x96xf32> to vector<8x32xf32>
    %50 = arith.addf %48, %49 : vector<8x32xf32>
    %51 = arith.negf %50 : vector<8x32xf32>
    %52 = math.exp %51 : vector<8x32xf32>
    %cst_37 = arith.constant 1.000000e+00 : f32
    %53 = vector.broadcast %cst_37 : f32 to vector<8x32xf32>
    %54 = arith.addf %53, %52 : vector<8x32xf32>
    %55 = arith.divf %53, %54 : vector<8x32xf32>
    %56 = vector.extract_strided_slice %35 {offsets = [0, 64], sizes = [8, 32], strides = [1, 1]} : vector<8x96xf32> to vector<8x32xf32>
    %57 = vector.extract_strided_slice %38 {offsets = [0, 64], sizes = [8, 32], strides = [1, 1]} : vector<8x96xf32> to vector<8x32xf32>
    %58 = arith.addf %57, %21 : vector<8x32xf32>
    %59 = arith.mulf %47, %58 : vector<8x32xf32>
    %60 = arith.addf %56, %59 : vector<8x32xf32>
    %61 = math.tanh %60 : vector<8x32xf32>
    %cst_38 = arith.constant 1.000000e+00 : f32
    %62 = vector.broadcast %cst_38 : f32 to vector<8x32xf32>
    %63 = arith.subf %62, %55 : vector<8x32xf32>
    %64 = arith.mulf %63, %61 : vector<8x32xf32>
    %65 = arith.mulf %55, %26 : vector<8x32xf32>
    %66 = arith.addf %64, %65 : vector<8x32xf32>
    %67 = vector.extract_strided_slice %37 {offsets = [0, 0], sizes = [8, 32], strides = [1, 1]} : vector<8x96xf32> to vector<8x32xf32>
    %68 = vector.extract_strided_slice %39 {offsets = [0, 0], sizes = [8, 32], strides = [1, 1]} : vector<8x96xf32> to vector<8x32xf32>
    %69 = arith.addf %67, %68 : vector<8x32xf32>
    %70 = arith.negf %69 : vector<8x32xf32>
    %71 = math.exp %70 : vector<8x32xf32>
    %cst_39 = arith.constant 1.000000e+00 : f32
    %72 = vector.broadcast %cst_39 : f32 to vector<8x32xf32>
    %73 = arith.addf %72, %71 : vector<8x32xf32>
    %74 = arith.divf %72, %73 : vector<8x32xf32>
    %75 = vector.extract_strided_slice %37 {offsets = [0, 32], sizes = [8, 32], strides = [1, 1]} : vector<8x96xf32> to vector<8x32xf32>
    %76 = vector.extract_strided_slice %39 {offsets = [0, 32], sizes = [8, 32], strides = [1, 1]} : vector<8x96xf32> to vector<8x32xf32>
    %77 = arith.addf %75, %76 : vector<8x32xf32>
    %78 = arith.negf %77 : vector<8x32xf32>
    %79 = math.exp %78 : vector<8x32xf32>
    %cst_40 = arith.constant 1.000000e+00 : f32
    %80 = vector.broadcast %cst_40 : f32 to vector<8x32xf32>
    %81 = arith.addf %80, %79 : vector<8x32xf32>
    %82 = arith.divf %80, %81 : vector<8x32xf32>
    %83 = vector.extract_strided_slice %37 {offsets = [0, 64], sizes = [8, 32], strides = [1, 1]} : vector<8x96xf32> to vector<8x32xf32>
    %84 = vector.extract_strided_slice %39 {offsets = [0, 64], sizes = [8, 32], strides = [1, 1]} : vector<8x96xf32> to vector<8x32xf32>
    %85 = arith.addf %84, %24 : vector<8x32xf32>
    %86 = arith.mulf %74, %85 : vector<8x32xf32>
    %87 = arith.addf %83, %86 : vector<8x32xf32>
    %88 = math.tanh %87 : vector<8x32xf32>
    %cst_41 = arith.constant 1.000000e+00 : f32
    %89 = vector.broadcast %cst_41 : f32 to vector<8x32xf32>
    %90 = arith.subf %89, %82 : vector<8x32xf32>
    %91 = arith.mulf %90, %88 : vector<8x32xf32>
    %92 = arith.mulf %82, %28 : vector<8x32xf32>
    %93 = arith.addf %91, %92 : vector<8x32xf32>
    %cst_42 = arith.constant -5.000000e+00 : f32
    %cst_43 = arith.constant 5.000000e+00 : f32
    %94 = vector.broadcast %cst_42 : f32 to vector<8x32xf32>
    %95 = arith.maximumf %94, %66 : vector<8x32xf32>
    %96 = vector.broadcast %cst_43 : f32 to vector<8x32xf32>
    %97 = arith.minimumf %96, %95 : vector<8x32xf32>
    %98 = arith.index_cast %c0_i32_30 : i32 to index
    %c0_44 = arith.constant 0 : index
    %c0_45 = arith.constant 0 : index
    %99 = vector.load %arg12[%98, %c0_44, %c0_45] : memref<4x8x32xf32, #tpu.memory_space<vmem>>, vector<1x8x32xf32>
    %100 = vector.shape_cast %99 : vector<1x8x32xf32> to vector<8x32xf32>
    %101 = vector.shape_cast %97 : vector<8x32xf32> to vector<1x8x32xf32>
    tpu.vector_store %arg12[%98, %c0_44, %c0_45], %101 {strides = array<i32>} : memref<4x8x32xf32, #tpu.memory_space<vmem>>, vector<1x8x32xf32>,
    %cst_46 = arith.constant -5.000000e+00 : f32
    %cst_47 = arith.constant 5.000000e+00 : f32
    %102 = vector.broadcast %cst_46 : f32 to vector<8x32xf32>
    %103 = arith.maximumf %102, %93 : vector<8x32xf32>
    %104 = vector.broadcast %cst_47 : f32 to vector<8x32xf32>
    %105 = arith.minimumf %104, %103 : vector<8x32xf32>
    %c3_i32_48 = arith.constant 3 : i32
    %106 = arith.subi %c3_i32_48, %c0_i32_30 : i32
    %107 = arith.index_cast %106 : i32 to index
    %c0_49 = arith.constant 0 : index
    %c0_50 = arith.constant 0 : index
    %108 = vector.load %arg13[%107, %c0_49, %c0_50] : memref<4x8x32xf32, #tpu.memory_space<vmem>>, vector<1x8x32xf32>
    %109 = vector.shape_cast %108 : vector<1x8x32xf32> to vector<8x32xf32>
    %110 = vector.shape_cast %105 : vector<8x32xf32> to vector<1x8x32xf32>
    tpu.vector_store %arg13[%107, %c0_49, %c0_50], %110 {strides = array<i32>} : memref<4x8x32xf32, #tpu.memory_space<vmem>>, vector<1x8x32xf32>,
    %c1_i32 = arith.constant 1 : i32
    %c8_i32_51 = arith.constant 8 : i32
    %111 = arith.muli %c1_i32, %c8_i32_51 : i32
    %112 = tpu.assume_multiple %111, 8 : i32
    %c3_i32_52 = arith.constant 3 : i32
    %113 = arith.subi %c3_i32_52, %c1_i32 : i32
    %c8_i32_53 = arith.constant 8 : i32
    %114 = arith.muli %113, %c8_i32_53 : i32
    %115 = tpu.assume_multiple %114, 8 : i32
    %116 = arith.index_cast %112 : i32 to index
    %c0_54 = arith.constant 0 : index
    %117 = vector.load %arg14[%116, %c0_54] : memref<32x96xf32, #tpu.memory_space<vmem>>, vector<8x96xf32>
    %118 = arith.index_cast %115 : i32 to index
    %c0_55 = arith.constant 0 : index
    %119 = vector.load %arg15[%118, %c0_55] : memref<32x96xf32, #tpu.memory_space<vmem>>, vector<8x96xf32>
    %cst_56 = arith.constant dense<0.000000e+00> : vector<8x96xf32>
    %120 = tpu.matmul %66, %17, %cst_56 {dimension_numbers = #tpu.dot_dimension_numbers<[1], [0], [0], [1], [0, 0, 1, 1], [], []>} : vector<8x32xf32>, vector<32x96xf32>, vector<8x96xf32> -> vector<8x96xf32>
    %cst_57 = arith.constant dense<0.000000e+00> : vector<8x96xf32>
    %121 = tpu.matmul %93, %18, %cst_57 {dimension_numbers = #tpu.dot_dimension_numbers<[1], [0], [0], [1], [0, 0, 1, 1], [], []>} : vector<8x32xf32>, vector<32x96xf32>, vector<8x96xf32> -> vector<8x96xf32>
    %122 = vector.extract_strided_slice %117 {offsets = [0, 0], sizes = [8, 32], strides = [1, 1]} : vector<8x96xf32> to vector<8x32xf32>
    %123 = vector.extract_strided_slice %120 {offsets = [0, 0], sizes = [8, 32], strides = [1, 1]} : vector<8x96xf32> to vector<8x32xf32>
    %124 = arith.addf %122, %123 : vector<8x32xf32>
    %125 = arith.negf %124 : vector<8x32xf32>
    %126 = math.exp %125 : vector<8x32xf32>
    %cst_58 = arith.constant 1.000000e+00 : f32
    %127 = vector.broadcast %cst_58 : f32 to vector<8x32xf32>
    %128 = arith.addf %127, %126 : vector<8x32xf32>
    %129 = arith.divf %127, %128 : vector<8x32xf32>
    %130 = vector.extract_strided_slice %117 {offsets = [0, 32], sizes = [8, 32], strides = [1, 1]} : vector<8x96xf32> to vector<8x32xf32>
    %131 = vector.extract_strided_slice %120 {offsets = [0, 32], sizes = [8, 32], strides = [1, 1]} : vector<8x96xf32> to vector<8x32xf32>
    %132 = arith.addf %130, %131 : vector<8x32xf32>
    %133 = arith.negf %132 : vector<8x32xf32>
    %134 = math.exp %133 : vector<8x32xf32>
    %cst_59 = arith.constant 1.000000e+00 : f32
    %135 = vector.broadcast %cst_59 : f32 to vector<8x32xf32>
    %136 = arith.addf %135, %134 : vector<8x32xf32>
    %137 = arith.divf %135, %136 : vector<8x32xf32>
    %138 = vector.extract_strided_slice %117 {offsets = [0, 64], sizes = [8, 32], strides = [1, 1]} : vector<8x96xf32> to vector<8x32xf32>
    %139 = vector.extract_strided_slice %120 {offsets = [0, 64], sizes = [8, 32], strides = [1, 1]} : vector<8x96xf32> to vector<8x32xf32>
    %140 = arith.addf %139, %21 : vector<8x32xf32>
    %141 = arith.mulf %129, %140 : vector<8x32xf32>
    %142 = arith.addf %138, %141 : vector<8x32xf32>
    %143 = math.tanh %142 : vector<8x32xf32>
    %cst_60 = arith.constant 1.000000e+00 : f32
    %144 = vector.broadcast %cst_60 : f32 to vector<8x32xf32>
    %145 = arith.subf %144, %137 : vector<8x32xf32>
    %146 = arith.mulf %145, %143 : vector<8x32xf32>
    %147 = arith.mulf %137, %66 : vector<8x32xf32>
    %148 = arith.addf %146, %147 : vector<8x32xf32>
    %149 = vector.extract_strided_slice %119 {offsets = [0, 0], sizes = [8, 32], strides = [1, 1]} : vector<8x96xf32> to vector<8x32xf32>
    %150 = vector.extract_strided_slice %121 {offsets = [0, 0], sizes = [8, 32], strides = [1, 1]} : vector<8x96xf32> to vector<8x32xf32>
    %151 = arith.addf %149, %150 : vector<8x32xf32>
    %152 = arith.negf %151 : vector<8x32xf32>
    %153 = math.exp %152 : vector<8x32xf32>
    %cst_61 = arith.constant 1.000000e+00 : f32
    %154 = vector.broadcast %cst_61 : f32 to vector<8x32xf32>
    %155 = arith.addf %154, %153 : vector<8x32xf32>
    %156 = arith.divf %154, %155 : vector<8x32xf32>
    %157 = vector.extract_strided_slice %119 {offsets = [0, 32], sizes = [8, 32], strides = [1, 1]} : vector<8x96xf32> to vector<8x32xf32>
    %158 = vector.extract_strided_slice %121 {offsets = [0, 32], sizes = [8, 32], strides = [1, 1]} : vector<8x96xf32> to vector<8x32xf32>
    %159 = arith.addf %157, %158 : vector<8x32xf32>
    %160 = arith.negf %159 : vector<8x32xf32>
    %161 = math.exp %160 : vector<8x32xf32>
    %cst_62 = arith.constant 1.000000e+00 : f32
    %162 = vector.broadcast %cst_62 : f32 to vector<8x32xf32>
    %163 = arith.addf %162, %161 : vector<8x32xf32>
    %164 = arith.divf %162, %163 : vector<8x32xf32>
    %165 = vector.extract_strided_slice %119 {offsets = [0, 64], sizes = [8, 32], strides = [1, 1]} : vector<8x96xf32> to vector<8x32xf32>
    %166 = vector.extract_strided_slice %121 {offsets = [0, 64], sizes = [8, 32], strides = [1, 1]} : vector<8x96xf32> to vector<8x32xf32>
    %167 = arith.addf %166, %24 : vector<8x32xf32>
    %168 = arith.mulf %156, %167 : vector<8x32xf32>
    %169 = arith.addf %165, %168 : vector<8x32xf32>
    %170 = math.tanh %169 : vector<8x32xf32>
    %cst_63 = arith.constant 1.000000e+00 : f32
    %171 = vector.broadcast %cst_63 : f32 to vector<8x32xf32>
    %172 = arith.subf %171, %164 : vector<8x32xf32>
    %173 = arith.mulf %172, %170 : vector<8x32xf32>
    %174 = arith.mulf %164, %93 : vector<8x32xf32>
    %175 = arith.addf %173, %174 : vector<8x32xf32>
    %cst_64 = arith.constant -5.000000e+00 : f32
    %cst_65 = arith.constant 5.000000e+00 : f32
    %176 = vector.broadcast %cst_64 : f32 to vector<8x32xf32>
    %177 = arith.maximumf %176, %148 : vector<8x32xf32>
    %178 = vector.broadcast %cst_65 : f32 to vector<8x32xf32>
    %179 = arith.minimumf %178, %177 : vector<8x32xf32>
    %180 = arith.index_cast %c1_i32 : i32 to index
    %c0_66 = arith.constant 0 : index
    %c0_67 = arith.constant 0 : index
    %181 = vector.load %arg12[%180, %c0_66, %c0_67] : memref<4x8x32xf32, #tpu.memory_space<vmem>>, vector<1x8x32xf32>
    %182 = vector.shape_cast %181 : vector<1x8x32xf32> to vector<8x32xf32>
    %183 = vector.shape_cast %179 : vector<8x32xf32> to vector<1x8x32xf32>
    tpu.vector_store %arg12[%180, %c0_66, %c0_67], %183 {strides = array<i32>} : memref<4x8x32xf32, #tpu.memory_space<vmem>>, vector<1x8x32xf32>,
    %cst_68 = arith.constant -5.000000e+00 : f32
    %cst_69 = arith.constant 5.000000e+00 : f32
    %184 = vector.broadcast %cst_68 : f32 to vector<8x32xf32>
    %185 = arith.maximumf %184, %175 : vector<8x32xf32>
    %186 = vector.broadcast %cst_69 : f32 to vector<8x32xf32>
    %187 = arith.minimumf %186, %185 : vector<8x32xf32>
    %c3_i32_70 = arith.constant 3 : i32
    %188 = arith.subi %c3_i32_70, %c1_i32 : i32
    %189 = arith.index_cast %188 : i32 to index
    %c0_71 = arith.constant 0 : index
    %c0_72 = arith.constant 0 : index
    %190 = vector.load %arg13[%189, %c0_71, %c0_72] : memref<4x8x32xf32, #tpu.memory_space<vmem>>, vector<1x8x32xf32>
    %191 = vector.shape_cast %190 : vector<1x8x32xf32> to vector<8x32xf32>
    %192 = vector.shape_cast %187 : vector<8x32xf32> to vector<1x8x32xf32>
    tpu.vector_store %arg13[%189, %c0_71, %c0_72], %192 {strides = array<i32>} : memref<4x8x32xf32, #tpu.memory_space<vmem>>, vector<1x8x32xf32>,
    %c2_i32 = arith.constant 2 : i32
    %c8_i32_73 = arith.constant 8 : i32
    %193 = arith.muli %c2_i32, %c8_i32_73 : i32
    %194 = tpu.assume_multiple %193, 8 : i32
    %c3_i32_74 = arith.constant 3 : i32
    %195 = arith.subi %c3_i32_74, %c2_i32 : i32
    %c8_i32_75 = arith.constant 8 : i32
    %196 = arith.muli %195, %c8_i32_75 : i32
    %197 = tpu.assume_multiple %196, 8 : i32
    %198 = arith.index_cast %194 : i32 to index
    %c0_76 = arith.constant 0 : index
    %199 = vector.load %arg14[%198, %c0_76] : memref<32x96xf32, #tpu.memory_space<vmem>>, vector<8x96xf32>
    %200 = arith.index_cast %197 : i32 to index
    %c0_77 = arith.constant 0 : index
    %201 = vector.load %arg15[%200, %c0_77] : memref<32x96xf32, #tpu.memory_space<vmem>>, vector<8x96xf32>
    %cst_78 = arith.constant dense<0.000000e+00> : vector<8x96xf32>
    %202 = tpu.matmul %148, %17, %cst_78 {dimension_numbers = #tpu.dot_dimension_numbers<[1], [0], [0], [1], [0, 0, 1, 1], [], []>} : vector<8x32xf32>, vector<32x96xf32>, vector<8x96xf32> -> vector<8x96xf32>
    %cst_79 = arith.constant dense<0.000000e+00> : vector<8x96xf32>
    %203 = tpu.matmul %175, %18, %cst_79 {dimension_numbers = #tpu.dot_dimension_numbers<[1], [0], [0], [1], [0, 0, 1, 1], [], []>} : vector<8x32xf32>, vector<32x96xf32>, vector<8x96xf32> -> vector<8x96xf32>
    %204 = vector.extract_strided_slice %199 {offsets = [0, 0], sizes = [8, 32], strides = [1, 1]} : vector<8x96xf32> to vector<8x32xf32>
    %205 = vector.extract_strided_slice %202 {offsets = [0, 0], sizes = [8, 32], strides = [1, 1]} : vector<8x96xf32> to vector<8x32xf32>
    %206 = arith.addf %204, %205 : vector<8x32xf32>
    %207 = arith.negf %206 : vector<8x32xf32>
    %208 = math.exp %207 : vector<8x32xf32>
    %cst_80 = arith.constant 1.000000e+00 : f32
    %209 = vector.broadcast %cst_80 : f32 to vector<8x32xf32>
    %210 = arith.addf %209, %208 : vector<8x32xf32>
    %211 = arith.divf %209, %210 : vector<8x32xf32>
    %212 = vector.extract_strided_slice %199 {offsets = [0, 32], sizes = [8, 32], strides = [1, 1]} : vector<8x96xf32> to vector<8x32xf32>
    %213 = vector.extract_strided_slice %202 {offsets = [0, 32], sizes = [8, 32], strides = [1, 1]} : vector<8x96xf32> to vector<8x32xf32>
    %214 = arith.addf %212, %213 : vector<8x32xf32>
    %215 = arith.negf %214 : vector<8x32xf32>
    %216 = math.exp %215 : vector<8x32xf32>
    %cst_81 = arith.constant 1.000000e+00 : f32
    %217 = vector.broadcast %cst_81 : f32 to vector<8x32xf32>
    %218 = arith.addf %217, %216 : vector<8x32xf32>
    %219 = arith.divf %217, %218 : vector<8x32xf32>
    %220 = vector.extract_strided_slice %199 {offsets = [0, 64], sizes = [8, 32], strides = [1, 1]} : vector<8x96xf32> to vector<8x32xf32>
    %221 = vector.extract_strided_slice %202 {offsets = [0, 64], sizes = [8, 32], strides = [1, 1]} : vector<8x96xf32> to vector<8x32xf32>
    %222 = arith.addf %221, %21 : vector<8x32xf32>
    %223 = arith.mulf %211, %222 : vector<8x32xf32>
    %224 = arith.addf %220, %223 : vector<8x32xf32>
    %225 = math.tanh %224 : vector<8x32xf32>
    %cst_82 = arith.constant 1.000000e+00 : f32
    %226 = vector.broadcast %cst_82 : f32 to vector<8x32xf32>
    %227 = arith.subf %226, %219 : vector<8x32xf32>
    %228 = arith.mulf %227, %225 : vector<8x32xf32>
    %229 = arith.mulf %219, %148 : vector<8x32xf32>
    %230 = arith.addf %228, %229 : vector<8x32xf32>
    %231 = vector.extract_strided_slice %201 {offsets = [0, 0], sizes = [8, 32], strides = [1, 1]} : vector<8x96xf32> to vector<8x32xf32>
    %232 = vector.extract_strided_slice %203 {offsets = [0, 0], sizes = [8, 32], strides = [1, 1]} : vector<8x96xf32> to vector<8x32xf32>
    %233 = arith.addf %231, %232 : vector<8x32xf32>
    %234 = arith.negf %233 : vector<8x32xf32>
    %235 = math.exp %234 : vector<8x32xf32>
    %cst_83 = arith.constant 1.000000e+00 : f32
    %236 = vector.broadcast %cst_83 : f32 to vector<8x32xf32>
    %237 = arith.addf %236, %235 : vector<8x32xf32>
    %238 = arith.divf %236, %237 : vector<8x32xf32>
    %239 = vector.extract_strided_slice %201 {offsets = [0, 32], sizes = [8, 32], strides = [1, 1]} : vector<8x96xf32> to vector<8x32xf32>
    %240 = vector.extract_strided_slice %203 {offsets = [0, 32], sizes = [8, 32], strides = [1, 1]} : vector<8x96xf32> to vector<8x32xf32>
    %241 = arith.addf %239, %240 : vector<8x32xf32>
    %242 = arith.negf %241 : vector<8x32xf32>
    %243 = math.exp %242 : vector<8x32xf32>
    %cst_84 = arith.constant 1.000000e+00 : f32
    %244 = vector.broadcast %cst_84 : f32 to vector<8x32xf32>
    %245 = arith.addf %244, %243 : vector<8x32xf32>
    %246 = arith.divf %244, %245 : vector<8x32xf32>
    %247 = vector.extract_strided_slice %201 {offsets = [0, 64], sizes = [8, 32], strides = [1, 1]} : vector<8x96xf32> to vector<8x32xf32>
    %248 = vector.extract_strided_slice %203 {offsets = [0, 64], sizes = [8, 32], strides = [1, 1]} : vector<8x96xf32> to vector<8x32xf32>
    %249 = arith.addf %248, %24 : vector<8x32xf32>
    %250 = arith.mulf %238, %249 : vector<8x32xf32>
    %251 = arith.addf %247, %250 : vector<8x32xf32>
    %252 = math.tanh %251 : vector<8x32xf32>
    %cst_85 = arith.constant 1.000000e+00 : f32
    %253 = vector.broadcast %cst_85 : f32 to vector<8x32xf32>
    %254 = arith.subf %253, %246 : vector<8x32xf32>
    %255 = arith.mulf %254, %252 : vector<8x32xf32>
    %256 = arith.mulf %246, %175 : vector<8x32xf32>
    %257 = arith.addf %255, %256 : vector<8x32xf32>
    %cst_86 = arith.constant -5.000000e+00 : f32
    %cst_87 = arith.constant 5.000000e+00 : f32
    %258 = vector.broadcast %cst_86 : f32 to vector<8x32xf32>
    %259 = arith.maximumf %258, %230 : vector<8x32xf32>
    %260 = vector.broadcast %cst_87 : f32 to vector<8x32xf32>
    %261 = arith.minimumf %260, %259 : vector<8x32xf32>
    %262 = arith.index_cast %c2_i32 : i32 to index
    %c0_88 = arith.constant 0 : index
    %c0_89 = arith.constant 0 : index
    %263 = vector.load %arg12[%262, %c0_88, %c0_89] : memref<4x8x32xf32, #tpu.memory_space<vmem>>, vector<1x8x32xf32>
    %264 = vector.shape_cast %263 : vector<1x8x32xf32> to vector<8x32xf32>
    %265 = vector.shape_cast %261 : vector<8x32xf32> to vector<1x8x32xf32>
    tpu.vector_store %arg12[%262, %c0_88, %c0_89], %265 {strides = array<i32>} : memref<4x8x32xf32, #tpu.memory_space<vmem>>, vector<1x8x32xf32>,
    %cst_90 = arith.constant -5.000000e+00 : f32
    %cst_91 = arith.constant 5.000000e+00 : f32
    %266 = vector.broadcast %cst_90 : f32 to vector<8x32xf32>
    %267 = arith.maximumf %266, %257 : vector<8x32xf32>
    %268 = vector.broadcast %cst_91 : f32 to vector<8x32xf32>
    %269 = arith.minimumf %268, %267 : vector<8x32xf32>
    %c3_i32_92 = arith.constant 3 : i32
    %270 = arith.subi %c3_i32_92, %c2_i32 : i32
    %271 = arith.index_cast %270 : i32 to index
    %c0_93 = arith.constant 0 : index
    %c0_94 = arith.constant 0 : index
    %272 = vector.load %arg13[%271, %c0_93, %c0_94] : memref<4x8x32xf32, #tpu.memory_space<vmem>>, vector<1x8x32xf32>
    %273 = vector.shape_cast %272 : vector<1x8x32xf32> to vector<8x32xf32>
    %274 = vector.shape_cast %269 : vector<8x32xf32> to vector<1x8x32xf32>
    tpu.vector_store %arg13[%271, %c0_93, %c0_94], %274 {strides = array<i32>} : memref<4x8x32xf32, #tpu.memory_space<vmem>>, vector<1x8x32xf32>,
    %c3_i32_95 = arith.constant 3 : i32
    %c8_i32_96 = arith.constant 8 : i32
    %275 = arith.muli %c3_i32_95, %c8_i32_96 : i32
    %276 = tpu.assume_multiple %275, 8 : i32
    %c3_i32_97 = arith.constant 3 : i32
    %277 = arith.subi %c3_i32_97, %c3_i32_95 : i32
    %c8_i32_98 = arith.constant 8 : i32
    %278 = arith.muli %277, %c8_i32_98 : i32
    %279 = tpu.assume_multiple %278, 8 : i32
    %280 = arith.index_cast %276 : i32 to index
    %c0_99 = arith.constant 0 : index
    %281 = vector.load %arg14[%280, %c0_99] : memref<32x96xf32, #tpu.memory_space<vmem>>, vector<8x96xf32>
    %282 = arith.index_cast %279 : i32 to index
    %c0_100 = arith.constant 0 : index
    %283 = vector.load %arg15[%282, %c0_100] : memref<32x96xf32, #tpu.memory_space<vmem>>, vector<8x96xf32>
    %cst_101 = arith.constant dense<0.000000e+00> : vector<8x96xf32>
    %284 = tpu.matmul %230, %17, %cst_101 {dimension_numbers = #tpu.dot_dimension_numbers<[1], [0], [0], [1], [0, 0, 1, 1], [], []>} : vector<8x32xf32>, vector<32x96xf32>, vector<8x96xf32> -> vector<8x96xf32>
    %cst_102 = arith.constant dense<0.000000e+00> : vector<8x96xf32>
    %285 = tpu.matmul %257, %18, %cst_102 {dimension_numbers = #tpu.dot_dimension_numbers<[1], [0], [0], [1], [0, 0, 1, 1], [], []>} : vector<8x32xf32>, vector<32x96xf32>, vector<8x96xf32> -> vector<8x96xf32>
    %286 = vector.extract_strided_slice %281 {offsets = [0, 0], sizes = [8, 32], strides = [1, 1]} : vector<8x96xf32> to vector<8x32xf32>
    %287 = vector.extract_strided_slice %284 {offsets = [0, 0], sizes = [8, 32], strides = [1, 1]} : vector<8x96xf32> to vector<8x32xf32>
    %288 = arith.addf %286, %287 : vector<8x32xf32>
    %289 = arith.negf %288 : vector<8x32xf32>
    %290 = math.exp %289 : vector<8x32xf32>
    %cst_103 = arith.constant 1.000000e+00 : f32
    %291 = vector.broadcast %cst_103 : f32 to vector<8x32xf32>
    %292 = arith.addf %291, %290 : vector<8x32xf32>
    %293 = arith.divf %291, %292 : vector<8x32xf32>
    %294 = vector.extract_strided_slice %281 {offsets = [0, 32], sizes = [8, 32], strides = [1, 1]} : vector<8x96xf32> to vector<8x32xf32>
    %295 = vector.extract_strided_slice %284 {offsets = [0, 32], sizes = [8, 32], strides = [1, 1]} : vector<8x96xf32> to vector<8x32xf32>
    %296 = arith.addf %294, %295 : vector<8x32xf32>
    %297 = arith.negf %296 : vector<8x32xf32>
    %298 = math.exp %297 : vector<8x32xf32>
    %cst_104 = arith.constant 1.000000e+00 : f32
    %299 = vector.broadcast %cst_104 : f32 to vector<8x32xf32>
    %300 = arith.addf %299, %298 : vector<8x32xf32>
    %301 = arith.divf %299, %300 : vector<8x32xf32>
    %302 = vector.extract_strided_slice %281 {offsets = [0, 64], sizes = [8, 32], strides = [1, 1]} : vector<8x96xf32> to vector<8x32xf32>
    %303 = vector.extract_strided_slice %284 {offsets = [0, 64], sizes = [8, 32], strides = [1, 1]} : vector<8x96xf32> to vector<8x32xf32>
    %304 = arith.addf %303, %21 : vector<8x32xf32>
    %305 = arith.mulf %293, %304 : vector<8x32xf32>
    %306 = arith.addf %302, %305 : vector<8x32xf32>
    %307 = math.tanh %306 : vector<8x32xf32>
    %cst_105 = arith.constant 1.000000e+00 : f32
    %308 = vector.broadcast %cst_105 : f32 to vector<8x32xf32>
    %309 = arith.subf %308, %301 : vector<8x32xf32>
    %310 = arith.mulf %309, %307 : vector<8x32xf32>
    %311 = arith.mulf %301, %230 : vector<8x32xf32>
    %312 = arith.addf %310, %311 : vector<8x32xf32>
    %313 = vector.extract_strided_slice %283 {offsets = [0, 0], sizes = [8, 32], strides = [1, 1]} : vector<8x96xf32> to vector<8x32xf32>
    %314 = vector.extract_strided_slice %285 {offsets = [0, 0], sizes = [8, 32], strides = [1, 1]} : vector<8x96xf32> to vector<8x32xf32>
    %315 = arith.addf %313, %314 : vector<8x32xf32>
    %316 = arith.negf %315 : vector<8x32xf32>
    %317 = math.exp %316 : vector<8x32xf32>
    %cst_106 = arith.constant 1.000000e+00 : f32
    %318 = vector.broadcast %cst_106 : f32 to vector<8x32xf32>
    %319 = arith.addf %318, %317 : vector<8x32xf32>
    %320 = arith.divf %318, %319 : vector<8x32xf32>
    %321 = vector.extract_strided_slice %283 {offsets = [0, 32], sizes = [8, 32], strides = [1, 1]} : vector<8x96xf32> to vector<8x32xf32>
    %322 = vector.extract_strided_slice %285 {offsets = [0, 32], sizes = [8, 32], strides = [1, 1]} : vector<8x96xf32> to vector<8x32xf32>
    %323 = arith.addf %321, %322 : vector<8x32xf32>
    %324 = arith.negf %323 : vector<8x32xf32>
    %325 = math.exp %324 : vector<8x32xf32>
    %cst_107 = arith.constant 1.000000e+00 : f32
    %326 = vector.broadcast %cst_107 : f32 to vector<8x32xf32>
    %327 = arith.addf %326, %325 : vector<8x32xf32>
    %328 = arith.divf %326, %327 : vector<8x32xf32>
    %329 = vector.extract_strided_slice %283 {offsets = [0, 64], sizes = [8, 32], strides = [1, 1]} : vector<8x96xf32> to vector<8x32xf32>
    %330 = vector.extract_strided_slice %285 {offsets = [0, 64], sizes = [8, 32], strides = [1, 1]} : vector<8x96xf32> to vector<8x32xf32>
    %331 = arith.addf %330, %24 : vector<8x32xf32>
    %332 = arith.mulf %320, %331 : vector<8x32xf32>
    %333 = arith.addf %329, %332 : vector<8x32xf32>
    %334 = math.tanh %333 : vector<8x32xf32>
    %cst_108 = arith.constant 1.000000e+00 : f32
    %335 = vector.broadcast %cst_108 : f32 to vector<8x32xf32>
    %336 = arith.subf %335, %328 : vector<8x32xf32>
    %337 = arith.mulf %336, %334 : vector<8x32xf32>
    %338 = arith.mulf %328, %257 : vector<8x32xf32>
    %339 = arith.addf %337, %338 : vector<8x32xf32>
    %cst_109 = arith.constant -5.000000e+00 : f32
    %cst_110 = arith.constant 5.000000e+00 : f32
    %340 = vector.broadcast %cst_109 : f32 to vector<8x32xf32>
    %341 = arith.maximumf %340, %312 : vector<8x32xf32>
    %342 = vector.broadcast %cst_110 : f32 to vector<8x32xf32>
    %343 = arith.minimumf %342, %341 : vector<8x32xf32>
    %344 = arith.index_cast %c3_i32_95 : i32 to index
    %c0_111 = arith.constant 0 : index
    %c0_112 = arith.constant 0 : index
    %345 = vector.load %arg12[%344, %c0_111, %c0_112] : memref<4x8x32xf32, #tpu.memory_space<vmem>>, vector<1x8x32xf32>
    %346 = vector.shape_cast %345 : vector<1x8x32xf32> to vector<8x32xf32>
    %347 = vector.shape_cast %343 : vector<8x32xf32> to vector<1x8x32xf32>
    tpu.vector_store %arg12[%344, %c0_111, %c0_112], %347 {strides = array<i32>} : memref<4x8x32xf32, #tpu.memory_space<vmem>>, vector<1x8x32xf32>,
    %cst_113 = arith.constant -5.000000e+00 : f32
    %cst_114 = arith.constant 5.000000e+00 : f32
    %348 = vector.broadcast %cst_113 : f32 to vector<8x32xf32>
    %349 = arith.maximumf %348, %339 : vector<8x32xf32>
    %350 = vector.broadcast %cst_114 : f32 to vector<8x32xf32>
    %351 = arith.minimumf %350, %349 : vector<8x32xf32>
    %c3_i32_115 = arith.constant 3 : i32
    %352 = arith.subi %c3_i32_115, %c3_i32_95 : i32
    %353 = arith.index_cast %352 : i32 to index
    %c0_116 = arith.constant 0 : index
    %c0_117 = arith.constant 0 : index
    %354 = vector.load %arg13[%353, %c0_116, %c0_117] : memref<4x8x32xf32, #tpu.memory_space<vmem>>, vector<1x8x32xf32>
    %355 = vector.shape_cast %354 : vector<1x8x32xf32> to vector<8x32xf32>
    %356 = vector.shape_cast %351 : vector<8x32xf32> to vector<1x8x32xf32>
    tpu.vector_store %arg13[%353, %c0_116, %c0_117], %356 {strides = array<i32>} : memref<4x8x32xf32, #tpu.memory_space<vmem>>, vector<1x8x32xf32>,
    %c4_i32 = arith.constant 4 : i32
    %c0_118 = arith.constant 0 : index
    %c0_119 = arith.constant 0 : index
    %c0_120 = arith.constant 0 : index
    %357 = vector.load %arg16[%c0_118, %c0_119, %c0_120] : memref<2x8x32xf32, #tpu.memory_space<vmem>>, vector<1x8x32xf32>
    %358 = vector.shape_cast %357 : vector<1x8x32xf32> to vector<8x32xf32>
    %359 = vector.shape_cast %312 : vector<8x32xf32> to vector<1x8x32xf32>
    tpu.vector_store %arg16[%c0_118, %c0_119, %c0_120], %359 {strides = array<i32>} : memref<2x8x32xf32, #tpu.memory_space<vmem>>, vector<1x8x32xf32>,
    %c1_121 = arith.constant 1 : index
    %c0_122 = arith.constant 0 : index
    %c0_123 = arith.constant 0 : index
    %360 = vector.load %arg16[%c1_121, %c0_122, %c0_123] : memref<2x8x32xf32, #tpu.memory_space<vmem>>, vector<1x8x32xf32>
    %361 = vector.shape_cast %360 : vector<1x8x32xf32> to vector<8x32xf32>
    %362 = vector.shape_cast %339 : vector<8x32xf32> to vector<1x8x32xf32>
    tpu.vector_store %arg16[%c1_121, %c0_122, %c0_123], %362 {strides = array<i32>} : memref<2x8x32xf32, #tpu.memory_space<vmem>>, vector<1x8x32xf32>,
    return
  }
  func.func @transform_0(%arg0: i32) -> (i32, i32) {
    %c0_i32 = arith.constant 0 : i32
    %c0_i32_0 = arith.constant 0 : i32
    return %arg0, %c0_i32 : i32, i32
  }
  func.func @transform_1(%arg0: i32) -> (i32, i32) {
    %c1_i32 = arith.constant 1 : i32
    %0 = arith.subi %c1_i32, %arg0 : i32
    %c0_i32 = arith.constant 0 : i32
    %c0_i32_0 = arith.constant 0 : i32
    return %0, %c0_i32 : i32, i32
  }
  func.func @transform_2(%arg0: i32) -> (i32, i32) {
    %c0_i32 = arith.constant 0 : i32
    %c0_i32_0 = arith.constant 0 : i32
    %c0_i32_1 = arith.constant 0 : i32
    return %c0_i32, %c0_i32_0 : i32, i32
  }
  func.func @transform_3(%arg0: i32) -> (i32, i32) {
    %c0_i32 = arith.constant 0 : i32
    %c0_i32_0 = arith.constant 0 : i32
    %c0_i32_1 = arith.constant 0 : i32
    return %c0_i32, %c0_i32_0 : i32, i32
  }
  func.func @transform_4(%arg0: i32) -> (i32, i32) {
    %c0_i32 = arith.constant 0 : i32
    %c0_i32_0 = arith.constant 0 : i32
    %c0_i32_1 = arith.constant 0 : i32
    return %c0_i32, %c0_i32_0 : i32, i32
  }
  func.func @transform_5(%arg0: i32) -> (i32, i32) {
    %c0_i32 = arith.constant 0 : i32
    %c0_i32_0 = arith.constant 0 : i32
    %c0_i32_1 = arith.constant 0 : i32
    return %c0_i32, %c0_i32_0 : i32, i32
  }
  func.func @transform_6(%arg0: i32) -> (i32, i32) {
    %c0_i32 = arith.constant 0 : i32
    %c0_i32_0 = arith.constant 0 : i32
    %c0_i32_1 = arith.constant 0 : i32
    return %c0_i32, %c0_i32_0 : i32, i32
  }
  func.func @transform_7(%arg0: i32) -> (i32, i32) {
    %c0_i32 = arith.constant 0 : i32
    %c0_i32_0 = arith.constant 0 : i32
    %c0_i32_1 = arith.constant 0 : i32
    return %c0_i32, %c0_i32_0 : i32, i32
  }
  func.func @transform_8(%arg0: i32) -> (i32, i32) {
    %c0_i32 = arith.constant 0 : i32
    %c0_i32_0 = arith.constant 0 : i32
    %c0_i32_1 = arith.constant 0 : i32
    return %c0_i32, %c0_i32_0 : i32, i32
  }
  func.func @transform_9(%arg0: i32) -> (i32, i32) {
    %c0_i32 = arith.constant 0 : i32
    %c0_i32_0 = arith.constant 0 : i32
    %c0_i32_1 = arith.constant 0 : i32
    return %c0_i32, %c0_i32_0 : i32, i32
  }
  func.func @transform_10(%arg0: i32) -> (i32, i32, i32) {
    %c0_i32 = arith.constant 0 : i32
    %c0_i32_0 = arith.constant 0 : i32
    %c0_i32_1 = arith.constant 0 : i32
    %c0_i32_2 = arith.constant 0 : i32
    return %c0_i32, %c0_i32_0, %c0_i32_1 : i32, i32, i32
  }
  func.func @transform_11(%arg0: i32) -> (i32, i32, i32) {
    %c0_i32 = arith.constant 0 : i32
    %c0_i32_0 = arith.constant 0 : i32
    %c0_i32_1 = arith.constant 0 : i32
    return %arg0, %c0_i32, %c0_i32_0 : i32, i32, i32
  }
  func.func @transform_12(%arg0: i32) -> (i32, i32, i32) {
    %c1_i32 = arith.constant 1 : i32
    %0 = arith.subi %c1_i32, %arg0 : i32
    %c0_i32 = arith.constant 0 : i32
    %c0_i32_0 = arith.constant 0 : i32
    %c0_i32_1 = arith.constant 0 : i32
    return %0, %c0_i32, %c0_i32_0 : i32, i32, i32
  }
}

</mosaic_0001>

<bundles_post_ra>
// kernel: tpu_custom_call.1
= control target key start
LH: loop header
LB: loop body
LE: loop exit
PB: predicated region body
PF: predicated region fallthrough
CT: control target
= control target key end

     0   :  { %s2826_s0 = inlined_call_operand.vmem [shape: f32[64,16], index: 0, kind: input, shape index: {}]   ;;  %s2827_s1 = inlined_call_operand.vmem [shape: f32[64,16], index: 1, kind: input, shape index: {}]   ;;  %s2828_s2 = inlined_call_operand.vmem [shape: f32[16,96], index: 2, kind: input, shape index: {}]   ;;  %s2829_s3 = inlined_call_operand.vmem [shape: f32[16,96], index: 3, kind: input, shape index: {}]   ;;  %s2830_s4 = inlined_call_operand.vmem [shape: f32[1,96], index: 4, kind: input, shape index: {}]   ;;  %s2831_s5 = inlined_call_operand.vmem [shape: f32[1,96], index: 5, kind: input, shape index: {}]   ;;  %s2832_s6 = inlined_call_operand.vmem [shape: f32[32,96], index: 6, kind: input, shape index: {}]   ;;  %s2833_s7 = inlined_call_operand.vmem [shape: f32[32,96], index: 7, kind: input, shape index: {}]   ;;  %s2834_s8 = inlined_call_operand.vmem [shape: f32[1,32], index: 8, kind: input, shape index: {}]   ;;  %s2835_s9 = inlined_call_operand.vmem [shape: f32[1,32], index: 9, kind: input, shape index: {}]   ;;  %s2836_s10 = inlined_call_operand.vmem [shape: f32[2,8,32], index: 10, kind: input, shape index: {}]   ;;  %s2837_s11 = inlined_call_operand.hbm [shape: f32[8,8,32], index: 11, kind: output, shape index: {0}]   ;;  %s2838_s12 = inlined_call_operand.hbm [shape: f32[8,8,32], index: 12, kind: output, shape index: {1}]  }
   0x1   :  { %2854 = sst [smem:[#allocation22_spill]] %s2838_s12 }
   0x2   :  { %18 = vsyncpa [#allocation6], 0 }
   0x3   :  { %20 = vsyncpa [#allocation6 + $0x1], 0 }
   0x4   :  { %21 = vsyncpa [#allocation8], 0 }
   0x5   :  { %23 = vsyncpa [#allocation8 + $0x1], 0  ;;  %s2310_s21 = smov 0   ;;  %s2312_s22 = smov 0  }
   0x6   :  { %s2314_s23 = smov 0   ;;  %s2316_s24 = smov 0  }
   0x7   :  { %s2318_s25 = smov 0   ;;  %s2320_s26 = smov 0  }
   0x8   :  { %s2322_s27 = smov 0  }
   0x9 LB: > { %2855 = sst [smem:[#allocation11_spill]] %s2210_s21  ;;  %s2346_s28 = sadd.s32 4294967295, %s2234_s27   ;;  %s2234_s27 = sphi %s2322_s27, %s2881_s27   ;;  %s2230_s26 = sphi %s2320_s26, %s2885_s26   ;;  %s2226_s25 = sphi %s2318_s25, %s2889_s25   ;;  %s2222_s24 = sphi %s2316_s24, %s2888_s24   ;;  %s2218_s23 = sphi %s2314_s23, %s2883_s23   ;;  %s2214_s22 = sphi %s2312_s22, %s2887_s22   ;;  %s2210_s21 = sphi %s2310_s21, %s2886_s21  }
   0xa   : > { %2856 = sst [smem:[#allocation12_spill]] %s2218_s23  ;;  %s1774_s29 = sadd.s32 4294967294, %s2234_s27  }
   0xb   : > { %2857 = sst [smem:[#allocation13_spill]] %s2222_s24  ;;  %s2350_s30 = sadd.s32 1, %s2234_s27  }
   0xc   : > { %2858 = sst [smem:[#allocation14_spill]] %s2230_s26  ;;  %s279_s13 = sadd.s32 1, %s2230_s26 }
   0xd   : > { %2859 = sst [smem:[#allocation15_spill]] %s2234_s27  ;;  %s276_s14 = ssub.s32 %s2234_s27, %s2350_s30 }
   0xe   : > { %2860 = sst [smem:[#allocation16_spill]] %s2350_s30  ;;  %p289_p0 = scmp.ne.s32.totalorder %s2230_s26, %s2226_s25 }
   0xf   : > { %p277_p1 = scmp.eq.s32.totalorder %s276_s14, 0  ;;  %p290_p2 = scmp.eq.s32.totalorder %s2346_s28, 1 }
  0x10   : > { %p295_p3 = scmp.ne.s32.totalorder %s2226_s25, %s2222_s24  ;;  %p2360_p4 = scmp.eq.s32.totalorder %s1774_s29, 1 }
  0x11   : > { %s2365_s16 = scalar_select %p277_p1, %s2230_s26, %s279_s13  }
  0x12   : > { %p2369_p5 = por %p290_p2, %p289_p0  ;;  %p2375_p6 = por %p2360_p4, %p295_p3 }
  0x13   : > { %2862 = sst [smem:[#allocation17_spill]] %s2365_s16  ;;  %s302_s19 = ssub.s32 1, %s2234_s27 }
  0x14   : > { %s2864_s18 = scalar_select %p2375_p6, 1, 0 }
  0x15   : > { %s303_s20 = ssub.s32 1, %s2350_s30  ;;  %s307_s14 = sadd.s32 1, %s2218_s23 }
  0x16   : > { %2865 = sst [smem:[#allocation18_spill]] %s2864_s18  ;;  %s304_s29 = ssub.s32 %s302_s19, %s303_s20 }
  0x17   : > { %p305_p7 = scmp.eq.s32.totalorder %s304_s29, 0  ;;  %p317_p8 = scmp.ne.s32.totalorder %s2218_s23, %s2214_s22 }
  0x18   : > { %p323_p9 = scmp.ne.s32.totalorder %s2214_s22, %s2210_s21  ;;  %p1777_p10 = scmp.ge.s32.totalorder %s2234_s27, 1 }
  0x19   : > { %s2388_s13 = scalar_select %p305_p7, %s2218_s23, %s307_s14  }
  0x1a   : > { %p2392_p11 = por %p317_p8, %p290_p2  ;;  %p2398_p12 = por %p323_p9, %p2360_p4 }
  0x1b   : > { %2866 = sst [smem:[#allocation19_spill]] %s2388_s13  ;;  %p389_p13 = scmp.lt.s32.totalorder %s2234_s27, 3 }
  0x1c   : > { %s2867_s16 = scalar_select %p2392_p11, 1, 0 }
  0x1d   : > { %s2869_s26 = scalar_select %p2398_p12, 1, 0 }
  0x1e   : > { %2868 = sst [smem:[#allocation20_spill]] %s2867_s16  ;;  %p390_p0 = pnand %p1777_p10, %p389_p13 }
  0x1f   : > { %2870 = sst [smem:[#allocation21_spill]] %s2869_s26  ;;  %s2849_s19 = sand.u32 (!%p390_p0), 1, %s2226_s25  }
  0x20   : > { %393 = sbr.rel (%p390_p0) target bundleno = 2817 (0xb01), region = 64  ;;  %s2850_s20 = sand.u32 (!%p390_p0), 1, %s2214_s22  }
  0x21   : > { %s1778_s29 = sshll.u32 (!%p390_p0), %s2849_s19, 5  ;;  %s1779_s15 = sshll.u32 (!%p390_p0), %s2850_s20, 5 }
  0x22   : > { %s1780_s14 = sshll.u32 (!%p390_p0), %s2346_s28, 2  ;;  %s2853_s13 = ssub.s32 (!%p390_p0), 1, %s2346_s28 }
  0x23   : > { %p443_p1 = scmp.lt.s32.totalorder (!%p390_p0), %s1780_s14, 7  ;;  %s1782_s23 = sshll.u32 (!%p390_p0), %s2853_s13, 2 }
  0x24   : > { %p450_p2 = scmp.lt.s32.totalorder (!%p390_p0), %s1782_s23, 7  ;;  %s2423_s20 = scalar_lea.vmem (!%p390_p0), [#allocation5], %s1778_s29 }
  0x25   : > { %s2891_s14 = smov (!%p443_p1, %s1780_s14), 7  ;;  %s2425_s16 = scalar_lea.vmem [#allocation7], %s1779_s15 }
  0x26   : > { %s2893_s23 = smov (!%p450_p2, %s1782_s23), 7  ;;  %s1781_s30 = sshll.u32 %s2891_s14, 3 }
  0x27   : > { %s2416_s18 = scalar_lea.vmem %s2826_s0, %s1781_s30  ;;  %s1783_s24 = sshll.u32 %s2893_s23, 3 }
  0x28   : > { %s2421_s19 = scalar_lea.vmem %s2827_s1, %s1783_s24  ;;  %p1784_p3 = scmp.ne.s32.totalorder %s2346_s28, 0 }
  0x2a   : > { %462 = sbr.rel (%p1784_p3) target bundleno = 49 (0x31), region = 68 }
  0x2f   : > { %v463_v0 = vld [vmem:[%s2836_s10] sm:$0xff]  ;;  %vm465_vm0 = vcmask 261120   ;;  %v464_v1 = vld [vmem:[%s2836_s10 + $0x8] sm:$0xff] }
  0x30   : > { %466 = vst.msk [vmem:[#allocation4] sm:$0xff] %vm465_vm0, %v463_v0  ;;  %467 = vst.msk [vmem:[#allocation4 + $0x8] sm:$0xff] %vm465_vm0, %v464_v1 }
  0x31 PF: > { %v473_v2 = vld [vmem:[%s2828_s2 + $0x8] sm:$0xff]  ;;  %v472_v4 = vld [vmem:[%s2828_s2] sm:$0xff]  ;;  %vm481_vm1 = vcmask 130048   ;;  %v470_v10 = vld [vmem:[%s2416_s18 + $0x10] sm:$0xff]  ;;  %v2236_v13 = vmov 0.0   ;;  %vm724_vm2 = vcmask 261120  }
  0x32   : > { %v589_v3 = vld [vmem:[%s2829_s3 + $0x8] sm:$0xff]  ;;  %1889 = vmatprep.subr.mxu0 %v473_v2  ;;  %v588_v5 = vld [vmem:[%s2829_s3] sm:$0xff]  ;;  %v2456_v11 = vld [vmem:[%s2832_s6 + $0x18] sm:$0xff]  ;;  %vm2237_vm3 = vmmov 0   ;;  %s2238_s24 = smov 64   ;;  %vm579_vm4 = vcmask 785408  }
  0x33   : > { %1899 = vmatprep.subr.mxu1 %v589_v3  ;;  %v468_v6 = vld [vmem:[%s2416_s18] sm:$0xff]  ;;  %1890 = vmatpush3.msra.mxu0 %v473_v2  ;;  %v469_v8 = vld [vmem:[%s2416_s18 + $0x8] sm:$0xff]  ;;  %v586_v12 = vld [vmem:[%s2421_s19 + $0x10] sm:$0xff]  ;;  %s2239_s15 = smov 32   ;;  %s2240_s14 = smov 96  }
  0x34   : > { %1900 = vmatpush3.msra.mxu1 %v589_v3  ;;  %v584_v7 = vld [vmem:[%s2421_s19] sm:$0xff]  ;;  %1891 = vmatprep.subr.mxu0 %v472_v4  ;;  %v585_v9 = vld [vmem:[%s2421_s19 + $0x8] sm:$0xff]  ;;  %v2466_v14 = vld [vmem:[%s2832_s6 + $0x10] sm:$0xff]  ;;  %s1835_s21 = sshll.u32 %s2346_s28, 9  ;;  %s1651_s26 = sshll.u32 %s2423_s20, 4  ;;  %s2721_s26 = int_to_ptr.vmem [resolvable:$true] %s1651_s26 }
  0x35   : > { %1901 = vmatprep.subr.mxu1 %v588_v5  ;;  %1892 = vmatpush3.msra.mxu0 %v472_v4  ;;  %v587_v15 = vld [vmem:[%s2421_s19 + $0x18] sm:$0xff]  ;;  %v2482_v18 = vld [vmem:[%s2832_s6 + $0x8] sm:$0xff]  ;;  %v2491_v19 = vld [vmem:[%s2833_s7 + $0x10] sm:$0xff]  ;;  %s2871_s27 = ssub.s32 1, %s2346_s28  ;;  %s2872_s19 = sand.u32 1, %s2226_s25  }
  0x36   : > { %1893 = vmatprep.mubr.msk.f32.mxu0 %vm481_vm1, %v468_v6  ;;  %1902 = vmatpush3.msra.mxu1 %v588_v5  ;;  %v471_v16 = vld [vmem:[%s2416_s18 + $0x18] sm:$0xff]  ;;  %v2496_v20 = vld [vmem:[%s2832_s6] sm:$0xff]  ;;  %v2507_v22 = vld [vmem:[%s2833_s7 + $0x8] sm:$0xff]  ;;  %s2725_s30 = sshll.u32 %s2871_s27, 9  ;;  %s1668_s18 = sshll.u32 %s2425_s16, 4  ;;  %s2766_s18 = int_to_ptr.vmem [resolvable:$true] %s1668_s18 }
  0x37   : > { %1903 = vmatprep.mubr.msk.f32.mxu1 %vm481_vm1, %v584_v7  ;;  %1894 = vmatmul.mubr.msk.f32.vlgmr.msra.gmra.mxu0 %vm481_vm1, %v469_v8  ;;  %v2477_v17 = vld [vmem:[%s2833_s7 + $0x18] sm:$0xff]  ;;  %v2502_v21 = vld [vmem:[#allocation4] sm:$0xff]  ;;  %v2525_v25 = vld [vmem:[#allocation4 + $0x8] sm:$0xff]  ;;  %s2732_s13 = scalar_lea.sflag [#allocation6], %s2872_s19  ;;  %s2120_s29 = scalar_lea.vmem %s2721_s26, 512 }
  0x38   : > { %1904 = vmatmul.mubr.msk.f32.vlgmr.msra.gmra.mxu1 %vm481_vm1, %v585_v9  ;;  %1909 = vmatprep.subr.mxu0 %v2236_v13  ;;  %v2517_v23 = vld [vmem:[%s2833_s7] sm:$0xff]  ;;  %p2121_p4 = scmp.ne.s32.totalorder %s2721_s26, %s2120_s29 }
  0x39   : > { %1896 = vmatprep.mubr.msk.f32.mxu0 %vm481_vm1, %v470_v10  ;;  %1910 = vmatpush3.msra.mxu0 %v2456_v11  ;;  %v1795_v24 = vld [vmem:[%s2834_s8] ss:$0 sm:$0xff] }
  0x3a   : > { %1906 = vmatprep.mubr.msk.f32.mxu1 %vm481_vm1, %v586_v12  ;;  %1911 = vmatprep.subr.mxu0 %v2236_v13  ;;  %v1796_v26 = vld [vmem:[%s2835_s9] ss:$0 sm:$0xff]  ;;  %p2122_p7 = pnand %p2121_p4, %p2369_p5 }
  0x3b   : > { %1920 = vmatprep.subr.mxu1 %v2236_v13  ;;  %1912 = vmatpush3.msra.mxu0 %v2466_v14  ;;  %v1785_v27 = vld [vmem:[%s2830_s4] ss:$0 sm:$0xff] }
  0x3c   : > { %1907 = vmatmul.mubr.msk.f32.gmra.mxu1 %vm481_vm1, %v587_v15  ;;  %1897 = vmatmul.mubr.msk.f32.gmra.mxu0 %vm481_vm1, %v471_v16  ;;  %v1790_v28 = vld [vmem:[%s2831_s5] ss:$0 sm:$0xff]  ;;  %p2123_p8 = pneg %p2122_p7 }
  0x3d   : > { %1913 = vmatprep.subr.mxu0 %v2236_v13  ;;  %1921 = vmatpush3.msra.mxu1 %v2477_v17 }
  0x3e   : > { %1914 = vmatpush3.msra.mxu0 %v2482_v18  ;;  %1922 = vmatprep.subr.mxu1 %v2236_v13 }
  0x3f   : > { %1915 = vmatprep.subr.mxu0 %v2236_v13  ;;  %1923 = vmatpush3.msra.mxu1 %v2491_v19 }
  0x40   : > { %1916 = vmatpush3.msra.mxu0 %v2496_v20  ;;  %1917 = vmatprep.mubr.msk.f32.mxu0 %vm2237_vm3, %v2236_v13 }
  0x41   : > { %1924 = vmatprep.subr.mxu1 %v2236_v13  ;;  %1918 = vmatmul.mubr.msk.f32.vlgmr.msra.gmra.mxu0 %vm724_vm2, %v2502_v21 }
  0x42   : > { %1925 = vmatpush3.msra.mxu1 %v2507_v22  ;;  %1928 = vmatprep.mubr.msk.f32.mxu1 %vm2237_vm3, %v2236_v13 }
  0x43   : > { %1926 = vmatprep.subr.mxu1 %v2236_v13  ;;  %878 = vrot.lane.b32.xlu0 %v1795_v24, %s2238_s24 }
  0x44   : > { %1927 = vmatpush3.msra.mxu1 %v2517_v23  ;;  %1931 = vmatprep.subr.mxu0 %v2236_v13 }
  0x45   : > { %1929 = vmatmul.mubr.msk.f32.vlgmr.msra.gmra.mxu1 %vm724_vm2, %v2525_v25  ;;  %1932 = vmatpush3.msra.mxu0 %v2456_v11 }
  0x46   : > { %1942 = vmatprep.subr.mxu1 %v2236_v13  ;;  %1933 = vmatprep.subr.mxu0 %v2236_v13 }
  0x47   : > { %1943 = vmatpush3.msra.mxu1 %v2477_v17  ;;  %911 = vrot.lane.b32.xlu0 %v1796_v26, %s2238_s24 }
  0x48   : > { %1934 = vmatpush3.msra.mxu0 %v2466_v14  ;;  %1944 = vmatprep.subr.mxu1 %v2236_v13 }
  0x49   : > { %1935 = vmatprep.subr.mxu0 %v2236_v13  ;;  %1939 = vmatprep.mubr.msk.f32.mxu0 %vm2237_vm3, %v2236_v13 }
  0x4a   : > { %1936 = vmatpush3.msra.mxu0 %v2482_v18  ;;  %1945 = vmatpush3.msra.mxu1 %v2491_v19 }
  0x4b   : > { %1937 = vmatprep.subr.mxu0 %v2236_v13  ;;  %1946 = vmatprep.subr.mxu1 %v2236_v13 }
  0x4c   : > { %1938 = vmatpush3.msra.mxu0 %v2496_v20  ;;  %1947 = vmatpush3.msra.mxu1 %v2507_v22 }
  0x4d   : > { %1950 = vmatprep.mubr.msk.f32.mxu1 %vm2237_vm3, %v2236_v13  ;;  %1948 = vmatprep.subr.mxu1 %v2236_v13 }
  0x4e   : > { %1953 = vmatprep.subr.mxu0 %v2236_v13  ;;  %1949 = vmatpush3.msra.mxu1 %v2517_v23 }
  0x4f   : > { %1964 = vmatprep.subr.mxu1 %v2236_v13 }
  0xb5   : > { %v2570_v40 = vpop.permute.xlu0 %878 }
  0xb9   : > { %v2577_v48 = vpop.permute.xlu0 %911 }
  0xf7   : > { %v1895_v29 = vpop.f32.mrf.mxu0 }
  0xf8   : > { %v1905_v30 = vpop.f32.mrf.mxu1  ;;  %v566_v31 = vadd.f32 %v1895_v29, %v1785_v27 }
  0xf9   : > { %v681_v32 = vadd.f32 %v1905_v30, %v1790_v28  ;;  %v560_v33 = vpop.f32.mrf.mxu0 }
  0xfa   : > { %v675_v34 = vpop.f32.mrf.mxu1  ;;  %581 = vst.msk [vmem:[#allocation2 + $0x8] sm:$0xff] %vm579_vm4, %v566_v31  ;;  %v561_v35 = vadd.f32 %v1785_v27, %v560_v33 }
  0xfb   : > { %695 = vst.msk [vmem:[#allocation3 + $0x8] sm:$0xff] %vm579_vm4, %v681_v32  ;;  %v676_v36 = vadd.f32 %v1790_v28, %v675_v34 }
  0xfc   : > { %v1908_v37 = vpop.f32.mrf.mxu1  ;;  %580 = vst.msk [vmem:[#allocation2] sm:$0xff] %vm579_vm4, %v561_v35  ;;  %v1898_v38 = vpop.f32.mrf.mxu0 }
  0xfd   : > { %694 = vst.msk [vmem:[#allocation3] sm:$0xff] %vm579_vm4, %v676_v36  ;;  %v691_v39 = vadd.f32 %v1908_v37, %v1790_v28  ;;  %v576_v41 = vadd.f32 %v1898_v38, %v1785_v27 }
  0xfe   : > { %v685_v42 = vpop.f32.mrf.mxu1  ;;  %v570_v43 = vpop.f32.mrf.mxu0 }
  0xff   : > { %697 = vst.msk [vmem:[#allocation3 + $0x18] sm:$0xff] %vm579_vm4, %v691_v39  ;;  %v686_v44 = vadd.f32 %v1790_v28, %v685_v42  ;;  %583 = vst.msk [vmem:[#allocation2 + $0x18] sm:$0xff] %vm579_vm4, %v576_v41  ;;  %v571_v45 = vadd.f32 %v1785_v27, %v570_v43 }
 0x101   : > { %696 = vst.msk [vmem:[#allocation3 + $0x10] sm:$0xff] %vm579_vm4, %v686_v44  ;;  %582 = vst.msk [vmem:[#allocation2 + $0x10] sm:$0xff] %vm579_vm4, %v571_v45  ;;  %v794_v46 = vpop.f32.mrf.mxu0  ;;  %v953_v41 = vld [vmem:[#allocation2 + $0x8] sm:$0xff] }
 0x102   : > { %v881_v47 = vadd.f32 %v2570_v40, %v794_v46 }
 0x103   : > { %v1919_v49 = vpop.f32.mrf.mxu0  ;;  %v721_v53 = vld [vmem:[#allocation2] sm:$0xff] }
 0x104   : > { %883 = vrot.lane.b32.xlu1 %v881_v47, %s2238_s24  ;;  %v871_v54 = vadd.f32 %v794_v46, %v721_v53 }
 0x105   : > { %v867_v50 = vpop.f32.mrf.mxu1 }
 0x106   : > { %v914_v51 = vadd.f32 %v2577_v48, %v867_v50  ;;  %v723_v55 = vld [vmem:[#allocation3 + $0x18] sm:$0xff]  ;;  %v1799_v56 = vmul.f32 -1.442695, %v871_v54 }
 0x107   : > { %v1930_v52 = vpop.f32.mrf.mxu1  ;;  %v904_v57 = vadd.f32 %v867_v50, %v723_v55 }
 0x108   : > { %916 = vrot.lane.b32.xlu1 %v914_v51, %s2238_s24  ;;  %2072 = vpow2.f32 %v1799_v56  ;;  %v955_v43 = vld [vmem:[#allocation3 + $0x10] sm:$0xff] }
 0x109   : > { %v1800_v58 = vmul.f32 -1.442695, %v904_v57 }
 0x10b   : > { %2074 = vpow2.f32 %v1800_v58 }
 0x115   : > { %v2073_v59 = vpop.eup %2072 }
 0x116   : > { %v875_v60 = vadd.f32 1.0, %v2073_v59 }
 0x118   : > { %v2075_v61 = vpop.eup %2074  ;;  %2076 = vrcp.f32 %v875_v60 }
 0x119   : > { %v908_v62 = vadd.f32 1.0, %v2075_v61 }
 0x11b   : > { %2078 = vrcp.f32 %v908_v62 }
 0x125   : > { %v2077_v63 = vpop.eup %2076 }
 0x126   : > { %v893_v15 = vsub.f32 1.0, %v2077_v63 }
 0x128   : > { %v2079_v2 = vpop.eup %2078 }
 0x129   : > { %v926_v27 = vsub.f32 1.0, %v2079_v2 }
 0x176   : > { %v884_v0 = vpop.permute.xlu1 %883 }
 0x177   : > { %v886_v1 = vmul.f32 %v2077_v63, %v884_v0 }
 0x179   : > { %888 = vrot.lane.b32.xlu0 %v886_v1, %s2238_s24 }
 0x17a   : > { %v917_v3 = vpop.permute.xlu1 %916 }
 0x17b   : > { %v919_v4 = vmul.f32 %v2079_v2, %v917_v3 }
 0x17d   : > { %921 = vrot.lane.b32.xlu1 %v919_v4, %s2238_s24 }
 0x181   : > { %899 = vrot.lane.b32.xlu1 %v2502_v21, %s2239_s15 }
 0x185   : > { %932 = vrot.lane.b32.xlu1 %v2525_v25, %s2239_s15  ;;  %s2241_s15 = smov [#allocation5]  }
 0x1eb   : > { %v889_v5 = vpop.permute.xlu0 %888 }
 0x1ec   : > { %v891_v6 = vadd.f32 %v889_v5, %v721_v53 }
 0x1ee   : > { %2080 = vtanh.f32 %v891_v6 }
 0x1ef   : > { %v922_v7 = vpop.permute.xlu1 %921 }
 0x1f0   : > { %v924_v8 = vadd.f32 %v922_v7, %v723_v55 }
 0x1f2   : > { %2082 = vtanh.f32 %v924_v8 }
 0x1f3   : > { %v900_v12 = vpop.permute.xlu1 %899 }
 0x1f4   : > { %v902_v24 = vmul.f32 %v2077_v63, %v900_v12 }
 0x1f7   : > { %v933_v26 = vpop.permute.xlu1 %932 }
 0x1f8   : > { %v935_v29 = vmul.f32 %v2079_v2, %v933_v26 }
 0x1fb   : > { %v2081_v9 = vpop.eup %2080 }
 0x1fc   : > { %895 = vrot.lane.b32.xlu0 %v2081_v9, %s2240_s14 }
 0x1ff   : > { %v2083_v10 = vpop.eup %2082 }
 0x200   : > { %928 = vrot.lane.b32.xlu0 %v2083_v10, %s2240_s14 }
 0x26e   : > { %v896_v16 = vpop.permute.xlu0 %895 }
 0x26f   : > { %v898_v21 = vmul.f32 %v896_v16, %v893_v15  ;;  %v1177_v15 = vld [vmem:[#allocation2 + $0x10] sm:$0xff] }
 0x271   : > { %v2588_v25 = vadd.f32 %v902_v24, %v898_v21  ;;  %v1179_v24 = vld [vmem:[#allocation3 + $0x8] sm:$0xff] }
 0x272   : > { %v929_v28 = vpop.permute.xlu0 %928 }
 0x273   : > { %v931_v30 = vmul.f32 %v929_v28, %v926_v27  ;;  %957 = vrot.lane.b32.xlu0 %v2588_v25, %s2240_s14 }
 0x275   : > { %v2592_v31 = vadd.f32 %v935_v29, %v931_v30 }
 0x277   : > { %1032 = vrot.lane.b32.xlu1 %v2592_v31, %s2240_s14 }
 0x2e5   : > { %v958_v32 = vpop.permute.xlu0 %957 }
 0x2e6   : > { %1940 = vmatmul.mubr.msk.f32.vlgmr.msra.gmra.mxu0 %vm724_vm2, %v958_v32 }
 0x2e7   : > { %1954 = vmatpush3.msra.mxu0 %v2456_v11  ;;  %1961 = vmatprep.mubr.msk.f32.mxu0 %vm2237_vm3, %v2236_v13 }
 0x2e8   : > { %1955 = vmatprep.subr.mxu0 %v2236_v13 }
 0x2e9   : > { %v1033_v33 = vpop.permute.xlu1 %1032  ;;  %1956 = vmatpush3.msra.mxu0 %v2466_v14 }
 0x2ea   : > { %1951 = vmatmul.mubr.msk.f32.vlgmr.msra.gmra.mxu1 %vm724_vm2, %v1033_v33  ;;  %1957 = vmatprep.subr.mxu0 %v2236_v13 }
 0x2eb   : > { %1958 = vmatpush3.msra.mxu0 %v2482_v18  ;;  %1965 = vmatpush3.msra.mxu1 %v2477_v17 }
 0x2ec   : > { %1959 = vmatprep.subr.mxu0 %v2236_v13  ;;  %1966 = vmatprep.subr.mxu1 %v2236_v13 }
 0x2ed   : > { %1960 = vmatpush3.msra.mxu0 %v2496_v20  ;;  %1967 = vmatpush3.msra.mxu1 %v2491_v19 }
 0x2ee   : > { %1968 = vmatprep.subr.mxu1 %v2236_v13  ;;  %1972 = vmatprep.mubr.msk.f32.mxu1 %vm2237_vm3, %v2236_v13 }
 0x2ef   : > { %1969 = vmatpush3.msra.mxu1 %v2507_v22  ;;  %1975 = vmatprep.subr.mxu0 %v2236_v13 }
 0x2f0   : > { %1970 = vmatprep.subr.mxu1 %v2236_v13 }
 0x2f1   : > { %1971 = vmatpush3.msra.mxu1 %v2517_v23 }
 0x2f2   : > { %1986 = vmatprep.subr.mxu1 %v2236_v13 }
 0x3a6   : > { %v1027_v34 = vpop.f32.mrf.mxu0 }
 0x3a7   : > { %v1113_v35 = vadd.f32 %v1027_v34, %v2570_v40  ;;  %v1106_v42 = vadd.f32 %v1027_v34, %v953_v41 }
 0x3a8   : > { %v1941_v36 = vpop.f32.mrf.mxu0 }
 0x3a9   : > { %1115 = vrot.lane.b32.xlu0 %v1113_v35, %s2238_s24  ;;  %v1806_v44 = vmul.f32 -1.442695, %v1106_v42 }
 0x3aa   : > { %v1102_v37 = vpop.f32.mrf.mxu1 }
 0x3ab   : > { %v1140_v38 = vadd.f32 %v1102_v37, %v2577_v48  ;;  %v1133_v45 = vadd.f32 %v1102_v37, %v955_v43  ;;  %2084 = vpow2.f32 %v1806_v44 }
 0x3ac   : > { %v1952_v39 = vpop.f32.mrf.mxu1 }
 0x3ad   : > { %1142 = vrot.lane.b32.xlu1 %v1140_v38, %s2238_s24  ;;  %v1807_v46 = vmul.f32 -1.442695, %v1133_v45 }
 0x3af   : > { %2086 = vpow2.f32 %v1807_v46 }
 0x3b8   : > { %v2085_v47 = vpop.eup %2084 }
 0x3b9   : > { %v1110_v49 = vadd.f32 1.0, %v2085_v47 }
 0x3bb   : > { %2088 = vrcp.f32 %v1110_v49 }
 0x3bc   : > { %v2087_v50 = vpop.eup %2086 }
 0x3bd   : > { %v1137_v51 = vadd.f32 1.0, %v2087_v50 }
 0x3bf   : > { %2090 = vrcp.f32 %v1137_v51 }
 0x3c8   : > { %v2089_v52 = vpop.eup %2088 }
 0x3c9   : > { %v1125_v0 = vsub.f32 1.0, %v2089_v52  ;;  %v1131_v2 = vmul.f32 %v2089_v52, %v2588_v25 }
 0x3cc   : > { %v2091_v55 = vpop.eup %2090 }
 0x3cd   : > { %v1152_v5 = vsub.f32 1.0, %v2091_v55  ;;  %v1158_v7 = vmul.f32 %v2091_v55, %v2592_v31 }
 0x41b   : > { %v1116_v53 = vpop.permute.xlu0 %1115 }
 0x41c   : > { %v1118_v54 = vmul.f32 %v2089_v52, %v1116_v53 }
 0x41e   : > { %1120 = vrot.lane.b32.xlu0 %v1118_v54, %s2238_s24 }
 0x41f   : > { %v1143_v56 = vpop.permute.xlu1 %1142 }
 0x420   : > { %v1145_v57 = vmul.f32 %v2091_v55, %v1143_v56 }
 0x422   : > { %1147 = vrot.lane.b32.xlu1 %v1145_v57, %s2238_s24 }
 0x490   : > { %v1121_v58 = vpop.permute.xlu0 %1120 }
 0x491   : > { %v1123_v59 = vadd.f32 %v1121_v58, %v953_v41 }
 0x493   : > { %2092 = vtanh.f32 %v1123_v59 }
 0x494   : > { %v1148_v60 = vpop.permute.xlu1 %1147 }
 0x495   : > { %v1150_v61 = vadd.f32 %v1148_v60, %v955_v43 }
 0x497   : > { %2094 = vtanh.f32 %v1150_v61 }
 0x4a0   : > { %v2093_v62 = vpop.eup %2092 }
 0x4a1   : > { %1127 = vrot.lane.b32.xlu0 %v2093_v62, %s2240_s14  ;;  %v1401_v62 = vld [vmem:[#allocation2 + $0x18] sm:$0xff] }
 0x4a4   : > { %v2095_v63 = vpop.eup %2094 }
 0x4a5   : > { %1154 = vrot.lane.b32.xlu1 %v2095_v63, %s2240_s14 }
 0x513   : > { %v1128_v1 = vpop.permute.xlu0 %1127 }
 0x514   : > { %v1130_v3 = vmul.f32 %v1128_v1, %v1125_v0  ;;  %v1402_v0 = vld [vmem:[#allocation3] sm:$0xff] }
 0x516   : > { %v2627_v4 = vadd.f32 %v1131_v2, %v1130_v3 }
 0x517   : > { %v1155_v6 = vpop.permute.xlu1 %1154 }
 0x518   : > { %v1157_v8 = vmul.f32 %v1155_v6, %v1152_v5  ;;  %1181 = vrot.lane.b32.xlu0 %v2627_v4, %s2240_s14 }
 0x51a   : > { %v2632_v9 = vadd.f32 %v1158_v7, %v1157_v8 }
 0x51c   : > { %1256 = vrot.lane.b32.xlu1 %v2632_v9, %s2240_s14 }
 0x58a   : > { %v1182_v10 = vpop.permute.xlu0 %1181 }
 0x58b   : > { %1962 = vmatmul.mubr.msk.f32.vlgmr.msra.gmra.mxu0 %vm724_vm2, %v1182_v10 }
 0x58c   : > { %1976 = vmatpush3.msra.mxu0 %v2456_v11  ;;  %1983 = vmatprep.mubr.msk.f32.mxu0 %vm2237_vm3, %v2236_v13 }
 0x58d   : > { %1977 = vmatprep.subr.mxu0 %v2236_v13 }
 0x58e   : > { %v1257_v12 = vpop.permute.xlu1 %1256  ;;  %1978 = vmatpush3.msra.mxu0 %v2466_v14 }
 0x58f   : > { %1973 = vmatmul.mubr.msk.f32.vlgmr.msra.gmra.mxu1 %vm724_vm2, %v1257_v12  ;;  %1979 = vmatprep.subr.mxu0 %v2236_v13 }
 0x590   : > { %1980 = vmatpush3.msra.mxu0 %v2482_v18  ;;  %1987 = vmatpush3.msra.mxu1 %v2477_v17 }
 0x591   : > { %1981 = vmatprep.subr.mxu0 %v2236_v13  ;;  %1988 = vmatprep.subr.mxu1 %v2236_v13 }
 0x592   : > { %1982 = vmatpush3.msra.mxu0 %v2496_v20  ;;  %1989 = vmatpush3.msra.mxu1 %v2491_v19 }
 0x593   : > { %1990 = vmatprep.subr.mxu1 %v2236_v13  ;;  %1994 = vmatprep.mubr.msk.f32.mxu1 %vm2237_vm3, %v2236_v13 }
 0x594   : > { %1991 = vmatpush3.msra.mxu1 %v2507_v22 }
 0x595   : > { %1992 = vmatprep.subr.mxu1 %v2236_v13 }
 0x596   : > { %1993 = vmatpush3.msra.mxu1 %v2517_v23 }
 0x64b   : > { %v1251_v11 = vpop.f32.mrf.mxu0 }
 0x64c   : > { %v1337_v14 = vadd.f32 %v1251_v11, %v2570_v40  ;;  %v1330_v16 = vadd.f32 %v1251_v11, %v1177_v15 }
 0x64d   : > { %v1963_v17 = vpop.f32.mrf.mxu0 }
 0x64e   : > { %1339 = vrot.lane.b32.xlu0 %v1337_v14, %s2238_s24  ;;  %v1814_v22 = vmul.f32 -1.442695, %v1330_v16  ;;  %v1801_v16 = vclamps-f32 %v2588_v25, 5.0 }
 0x64f   : > { %v1326_v18 = vpop.f32.mrf.mxu1 }
 0x650   : > { %v1364_v19 = vadd.f32 %v1326_v18, %v2577_v48  ;;  %v1357_v21 = vadd.f32 %v1326_v18, %v1179_v24  ;;  %2096 = vpow2.f32 %v1814_v22  ;;  %v1802_v22 = vclamps-f32 %v2592_v31, 5.0 }
 0x651   : > { %v1974_v20 = vpop.f32.mrf.mxu1 }
 0x652   : > { %1366 = vrot.lane.b32.xlu1 %v1364_v19, %s2238_s24  ;;  %v1815_v13 = vmul.f32 -1.442695, %v1357_v21  ;;  %v1808_v21 = vclamps-f32 %v2627_v4, 5.0 }
 0x654   : > { %2098 = vpow2.f32 %v1815_v13  ;;  %v1810_v13 = vclamps-f32 %v2632_v9, 5.0 }
 0x65d   : > { %v2097_v23 = vpop.eup %2096 }
 0x65e   : > { %v1334_v26 = vadd.f32 1.0, %v2097_v23 }
 0x660   : > { %2100 = vrcp.f32 %v1334_v26 }
 0x661   : > { %v2099_v27 = vpop.eup %2098 }
 0x662   : > { %v1361_v28 = vadd.f32 1.0, %v2099_v27 }
 0x664   : > { %2102 = vrcp.f32 %v1361_v28 }
 0x66d   : > { %v2101_v29 = vpop.eup %2100 }
 0x66e   : > { %v1349_v43 = vsub.f32 1.0, %v2101_v29  ;;  %v1355_v45 = vmul.f32 %v2101_v29, %v2627_v4 }
 0x671   : > { %v2103_v33 = vpop.eup %2102 }
 0x672   : > { %v1376_v49 = vsub.f32 1.0, %v2103_v33  ;;  %v1382_v51 = vmul.f32 %v2103_v33, %v2632_v9 }
 0x6c0   : > { %v1340_v30 = vpop.permute.xlu0 %1339 }
 0x6c1   : > { %v1342_v32 = vmul.f32 %v2101_v29, %v1340_v30 }
 0x6c3   : > { %1344 = vrot.lane.b32.xlu0 %v1342_v32, %s2238_s24 }
 0x6c4   : > { %v1367_v34 = vpop.permute.xlu1 %1366 }
 0x6c5   : > { %v1369_v35 = vmul.f32 %v2103_v33, %v1367_v34 }
 0x6c7   : > { %1371 = vrot.lane.b32.xlu1 %v1369_v35, %s2238_s24 }
 0x735   : > { %v1345_v36 = vpop.permute.xlu0 %1344 }
 0x736   : > { %v1347_v37 = vadd.f32 %v1345_v36, %v1177_v15 }
 0x738   : > { %2104 = vtanh.f32 %v1347_v37 }
 0x739   : > { %v1372_v38 = vpop.permute.xlu1 %1371 }
 0x73a   : > { %v1374_v39 = vadd.f32 %v1372_v38, %v1179_v24 }
 0x73c   : > { %2106 = vtanh.f32 %v1374_v39 }
 0x745   : > { %v2105_v41 = vpop.eup %2104 }
 0x746   : > { %1351 = vrot.lane.b32.xlu0 %v2105_v41, %s2240_s14 }
 0x749   : > { %v2107_v42 = vpop.eup %2106 }
 0x74a   : > { %1378 = vrot.lane.b32.xlu1 %v2107_v42, %s2240_s14 }
 0x7b8   : > { %v1352_v44 = vpop.permute.xlu0 %1351 }
 0x7b9   : > { %v1354_v46 = vmul.f32 %v1352_v44, %v1349_v43 }
 0x7bb   : > { %v2665_v47 = vadd.f32 %v1355_v45, %v1354_v46 }
 0x7bc   : > { %v1379_v50 = vpop.permute.xlu1 %1378 }
 0x7bd   : > { %v1381_v52 = vmul.f32 %v1379_v50, %v1376_v49  ;;  %1404 = vrot.lane.b32.xlu0 %v2665_v47, %s2240_s14  ;;  %v1816_v23 = vclamps-f32 %v2665_v47, 5.0 }
 0x7bf   : > { %v2670_v53 = vadd.f32 %v1382_v51, %v1381_v52 }
 0x7c1   : > { %1479 = vrot.lane.b32.xlu1 %v2670_v53, %s2240_s14  ;;  %v1818_v25 = vclamps-f32 %v2670_v53, 5.0 }
 0x82f   : > { %v1405_v54 = vpop.permute.xlu0 %1404 }
 0x830   : > { %1984 = vmatmul.mubr.msk.f32.vlgmr.msra.gmra.mxu0 %vm724_vm2, %v1405_v54 }
 0x833   : > { %v1480_v55 = vpop.permute.xlu1 %1479 }
 0x834   : > { %1995 = vmatmul.mubr.msk.f32.vlgmr.msra.gmra.mxu1 %vm724_vm2, %v1480_v55 }
 0x8f0   : > { %v1474_v56 = vpop.f32.mrf.mxu0 }
 0x8f1   : > { %v1560_v57 = vadd.f32 %v1474_v56, %v2570_v40  ;;  %v1553_v63 = vadd.f32 %v1474_v56, %v1401_v62 }
 0x8f2   : > { %v1985_v58 = vpop.f32.mrf.mxu0 }
 0x8f3   : > { %1562 = vrot.lane.b32.xlu0 %v1560_v57, %s2238_s24  ;;  %v1822_v1 = vmul.f32 -1.442695, %v1553_v63 }
 0x8f4   : > { %v1549_v59 = vpop.f32.mrf.mxu1 }
 0x8f5   : > { %v1587_v60 = vadd.f32 %v1549_v59, %v2577_v48  ;;  %v1580_v2 = vadd.f32 %v1549_v59, %v1402_v0  ;;  %2108 = vpow2.f32 %v1822_v1 }
 0x8f6   : > { %v1996_v61 = vpop.f32.mrf.mxu1 }
 0x8f7   : > { %1589 = vrot.lane.b32.xlu1 %v1587_v60, %s2238_s24  ;;  %v1823_v3 = vmul.f32 -1.442695, %v1580_v2 }
 0x8f9   : > { %2110 = vpow2.f32 %v1823_v3 }
 0x902   : > { %v2109_v5 = vpop.eup %2108 }
 0x903   : > { %v1557_v6 = vadd.f32 1.0, %v2109_v5 }
 0x905   : > { %2112 = vrcp.f32 %v1557_v6 }
 0x906   : > { %v2111_v40 = vpop.eup %2110 }
 0x907   : > { %v1584_v7 = vadd.f32 1.0, %v2111_v40 }
 0x909   : > { %2114 = vrcp.f32 %v1584_v7 }
 0x912   : > { %v2113_v8 = vpop.eup %2112 }
 0x913   : > { %v1572_v31 = vsub.f32 1.0, %v2113_v8  ;;  %v1578_v26 = vmul.f32 %v2113_v8, %v2665_v47 }
 0x916   : > { %v2115_v12 = vpop.eup %2114 }
 0x917   : > { %v1599_v9 = vsub.f32 1.0, %v2115_v12  ;;  %v1605_v32 = vmul.f32 %v2115_v12, %v2670_v53 }
 0x965   : > { %v1563_v10 = vpop.permute.xlu0 %1562 }
 0x966   : > { %v1565_v48 = vmul.f32 %v2113_v8, %v1563_v10 }
 0x968   : > { %1567 = vrot.lane.b32.xlu0 %v1565_v48, %s2238_s24 }
 0x969   : > { %v1590_v11 = vpop.permute.xlu1 %1589 }
 0x96a   : > { %v1592_v14 = vmul.f32 %v2115_v12, %v1590_v11 }
 0x96c   : > { %1594 = vrot.lane.b32.xlu1 %v1592_v14, %s2238_s24  ;;  %s2719_s24 = scalar_lea.hbm %s2837_s11, %s1835_s21 }
 0x9da   : > { %v1568_v17 = vpop.permute.xlu0 %1567 }
 0x9db   : > { %v1570_v18 = vadd.f32 %v1568_v17, %v1401_v62 }
 0x9dd   : > { %2116 = vtanh.f32 %v1570_v18 }
 0x9de   : > { %v1595_v19 = vpop.permute.xlu1 %1594 }
 0x9df   : > { %v1597_v20 = vadd.f32 %v1595_v19, %v1402_v0 }
 0x9e1   : > { %2118 = vtanh.f32 %v1597_v20 }
 0x9ea   : > { %v2117_v15 = vpop.eup %2116 }
 0x9eb   : > { %1574 = vrot.lane.b32.xlu0 %v2117_v15, %s2240_s14 }
 0x9ee   : > { %v2119_v24 = vpop.eup %2118 }
 0x9ef   : > { %1601 = vrot.lane.b32.xlu1 %v2119_v24, %s2240_s14  ;;  %940 = vrot.lane.b32.xlu0 %v1801_v16, %s2240_s14 }
 0x9f3   : > { %947 = vrot.lane.b32.xlu1 %v1802_v22, %s2240_s14  ;;  %1163 = vrot.lane.b32.xlu0 %v1808_v21, %s2240_s14 }
 0x9f7   : > { %1171 = vrot.lane.b32.xlu1 %v1810_v13, %s2240_s14  ;;  %1387 = vrot.lane.b32.xlu0 %v1816_v23, %s2240_s14 }
 0x9fb   : > { %1395 = vrot.lane.b32.xlu1 %v1818_v25, %s2240_s14 }
 0xa5d   : > { %v1575_v4 = vpop.permute.xlu0 %1574 }
 0xa5e   : > { %v1577_v27 = vmul.f32 %v1575_v4, %v1572_v31 }
 0xa60   : > { %v1579_v28 = vadd.f32 %v1578_v26, %v1577_v27 }
 0xa61   : > { %v1602_v29 = vpop.permute.xlu1 %1601  ;;  %v941_v30 = vpop.permute.xlu0 %940 }
 0xa62   : > { %v1604_v33 = vmul.f32 %v1602_v29, %v1599_v9  ;;  %943 = vst.msk [vmem:[%s2423_s20] sm:$0xff] %vm724_vm2, %v941_v30  ;;  %v1824_v34 = vclamps-f32 %v1579_v28, 5.0 }
 0xa64   : > { %v1606_v35 = vadd.f32 %v1605_v32, %v1604_v33  ;;  %1610 = vrot.lane.b32.xlu0 %v1824_v34, %s2240_s14 }
 0xa65   : > { %v948_v36 = vpop.permute.xlu1 %947  ;;  %v1164_v37 = vpop.permute.xlu0 %1163 }
 0xa66   : > { %1803 = vst.msk [vmem:[%s2425_s16 + $0x18] sm:$0xff] %vm724_vm2, %v948_v36  ;;  %1809 = vst.msk [vmem:[%s2423_s20 + $0x8] sm:$0xff] %vm724_vm2, %v1164_v37  ;;  %v1826_v38 = vclamps-f32 %v1606_v35, 5.0 }
 0xa68   : > { %1618 = vrot.lane.b32.xlu1 %v1826_v38, %s2240_s14  ;;  %1623 = vrot.lane.b32.xlu0 %v1579_v28, %s2240_s14 }
 0xa69   : > { %v1172_v39 = vpop.permute.xlu1 %1171  ;;  %v1388_v41 = vpop.permute.xlu0 %1387 }
 0xa6a   : > { %1811 = vst.msk [vmem:[%s2425_s16 + $0x10] sm:$0xff] %vm724_vm2, %v1172_v39  ;;  %1817 = vst.msk [vmem:[%s2423_s20 + $0x10] sm:$0xff] %vm724_vm2, %v1388_v41 }
 0xa6c   : > { %1628 = vrot.lane.b32.xlu1 %v1606_v35, %s2240_s14  ;;  %s2124_s14 = sshll.u32 %s2241_s15, 4  ;;  %s2125_s14 = int_to_ptr.vmem [resolvable:$false] %s2124_s14 }
 0xa6d   : > { %v1396_v42 = vpop.permute.xlu1 %1395  ;;  %s2126_s21 = scalar_lea.vmem %s2125_s14, 1024  ;;  %p2127_p9 = scmp.lt.s32.totalorder %s2721_s26, %s2125_s14 }
 0xa6e   : > { %1819 = vst.msk [vmem:[%s2425_s16 + $0x8] sm:$0xff] %vm724_vm2, %v1396_v42  ;;  %p2128_p10 = scmp.lt.s32.totalorder %s2126_s21, %s2120_s29 }
 0xa70   : > { %p2129_p13 = por %p2128_p10, %p2127_p9 }
 0xa72   : > { %p2130_p0 = pnand %p2129_p13, %p2123_p8 }
 0xad6   : > { %v1611_v43 = vpop.permute.xlu0 %1610 }
 0xad7   : > { %1825 = vst.msk [vmem:[%s2423_s20 + $0x18] sm:$0xff] %vm724_vm2, %v1611_v43 }
 0xad8   : > { %2133 = shalt.err (!%p2130_p0)
}
 0xad9   : > { %s2134_s28 = scalar_lea.hbm %s2719_s24, 512  ;;  %s2138_s23 = scalar_lea.hbm %s2837_s11, 1024 }
 0xada   : > { %p2135_p1 = scmp.ne.s32.totalorder %s2719_s24, %s2134_s28  ;;  %p2139_p4 = scmp.lt.s32.totalorder %s2719_s24, %s2837_s11 }
 0xadb   : > { %p2140_p7 = scmp.lt.s32.totalorder %s2138_s23, %s2134_s28 }
 0xadc   : > { %p2136_p2 = pnand %p2135_p1, %p2369_p5 }
 0xadd   : > { %p2141_p8 = por %p2140_p7, %p2139_p4 }
 0xade   : > { %p2137_p3 = pneg %p2136_p2 }
 0xae0   : > { %p2142_p9 = pnand %p2141_p8, %p2137_p3 }
 0xae2   : > { %2145 = shalt.err (!%p2142_p9)
}
 0xae3   : > { %s2242_s29 = smov 128   ;;  %s2243_s14 = smov 8   ;;  %v1619_v44 = vpop.permute.xlu1 %1618  ;;  %v1624_v45 = vpop.permute.xlu0 %1623 }
 0xae4   : > { %1997 = dma.vmem_to_hbm [thread:$0]  (%p2369_p5), %s2721_s26, 512, %s2719_s24, %s2732_s13, %s2242_s29, %s2242_s29, %s2243_s14   ;;  %1626 = vst.msk [vmem:[#allocation4] sm:$0xff] %vm724_vm2, %v1624_v45 }
 0xae5   : > { %s2874_s20 = sld [smem:[#allocation22_spill]]  ;;  %1621 = vst.msk [vmem:[%s2425_s16] sm:$0xff] %vm724_vm2, %v1619_v44  ;;  %s2875_s17 = sand.u32 1, %s2214_s22  }
 0xae6   : > { %s1638_s23 = scalar_lea.sflag [#allocation8], %s2875_s17  ;;  %s2146_s26 = scalar_lea.vmem %s2766_s18, 512 }
 0xae7   : > { %p2147_p5 = scmp.ne.s32.totalorder %s2766_s18, %s2146_s26  ;;  %s2244_s24 = smov [#allocation7]  }
 0xae9   : > { %p2148_p10 = pnand %p2147_p5, %p2392_p11 }
 0xaeb   : > { %s2762_s12 = scalar_lea.hbm %s2874_s20, %s2725_s30  ;;  %p2149_p13 = pneg %p2148_p10 }
 0xaec   : > { %s2150_s30 = sshll.u32 %s2244_s24, 4  ;;  %s2151_s30 = int_to_ptr.vmem [resolvable:$false] %s2150_s30 }
 0xaed   : > { %s2152_s13 = scalar_lea.vmem %s2151_s30, 1024  ;;  %p2153_p0 = scmp.lt.s32.totalorder %s2766_s18, %s2151_s30 }
 0xaee   : > { %p2154_p1 = scmp.lt.s32.totalorder %s2152_s13, %s2146_s26 }
 0xaf0   : > { %p2155_p2 = por %p2154_p1, %p2153_p0 }
 0xaf2   : > { %p2156_p3 = pnand %p2155_p2, %p2149_p13 }
 0xaf4   : > { %2159 = shalt.err (!%p2156_p3)
}
 0xaf5   : > { %s2160_s16 = scalar_lea.hbm %s2762_s12, 512  ;;  %s2164_s21 = scalar_lea.hbm %s2874_s20, 1024 }
 0xaf6   : > { %p2161_p4 = scmp.ne.s32.totalorder %s2762_s12, %s2160_s16  ;;  %p2165_p9 = scmp.lt.s32.totalorder %s2762_s12, %s2874_s20 }
 0xaf7   : > { %p2166_p5 = scmp.lt.s32.totalorder %s2164_s21, %s2160_s16 }
 0xaf8   : > { %p2162_p7 = pnand %p2161_p4, %p2392_p11 }
 0xaf9   : > { %p2167_p10 = por %p2166_p5, %p2165_p9 }
 0xafa   : > { %p2163_p8 = pneg %p2162_p7 }
 0xafc   : > { %p2168_p13 = pnand %p2167_p10, %p2163_p8 }
 0xafe   : > { %2171 = shalt.err (!%p2168_p13)
}
 0xaff   : > { %1998 = dma.vmem_to_hbm [thread:$0]  (%p2392_p11), %s2766_s18, 512, %s2762_s12, %s1638_s23, %s2242_s29, %s2242_s29, %s2243_s14   ;;  %v1629_v46 = vpop.permute.xlu1 %1628 }
 0xb00   : > { %1631 = vst.msk [vmem:[#allocation4 + $0x8] sm:$0xff] %vm724_vm2, %v1629_v46 }
 0xb01 PF: > { %s2876_s26 = sld [smem:[#allocation15_spill]] }
 0xb02   : > { %s2877_s24 = sld [smem:[#allocation13_spill]] }
 0xb07   : > { %p2008_p0 = scmp.ge.s32.totalorder %s2876_s26, 2 }
 0xb08   : > { %s1683_s13 = sand.u32 1, %s2877_s24  }
 0xb09   : > { %p2002_p1 = pnand %p2008_p0, %p2375_p6  ;;  %s1684_s16 = scalar_lea.sflag [#allocation6], %s1683_s13 }
 0xb0b   : > { %p2003_p2 = pneg %p2002_p1 }
 0xb0d   : > { %2201 = dma.done.wait (%p2003_p2), %s1684_s16, 512  }
 0xb0e   : > { %2203 = vsyncadd (%p2003_p2), %s1684_s16, 4294966784  ;;  %s2879_s15 = sld [smem:[#allocation11_spill]]  ;;  %p2005_p11 = pnand %p2008_p0, %p2398_p12 }
 0xb10   : > { %p2006_p3 = pneg %p2005_p11 }
 0xb14   : > { %s1692_s19 = sand.u32 1, %s2879_s15  }
 0xb15   : > { %s1693_s18 = scalar_lea.sflag [#allocation8], %s1692_s19 }
 0xb16   : > { %2205 = dma.done.wait (%p2006_p3), %s1693_s18, 512  }
 0xb17   : > { %2207 = vsyncadd (%p2006_p3), %s1693_s18, 4294966784  ;;  %s2881_s27 = sld [smem:[#allocation16_spill]]  ;;  %s2886_s21 = smov %s2214_s22 }
 0xb18   : > { %s2882_s29 = sld [smem:[#allocation12_spill]]  ;;  %s2888_s24 = smov %s2226_s25 }
 0xb19   : > { %s2883_s23 = sld [smem:[#allocation19_spill]] }
 0xb1a   : > { %s2884_s14 = sld [smem:[#allocation14_spill]] }
 0xb1b   : > { %s2885_s26 = sld [smem:[#allocation17_spill]] }
 0xb1d   : > { %p26_p6 = scmp.ge.s32.totalorder %s2881_s27, 4  }
 0xb1e   : > { %s2887_s22 = smov %s2882_s29 }
 0xb1f   :  { %28 = sbr.rel (!%p26_p6) target bundleno = 9 (0x9), region = 136 }
 0xb20   : > { %s2889_s25 = smov %s2884_s14 }
 0xb24   :  { %1698 = vsyncpa [#allocation6], 1 }
 0xb25   :  { %1700 = vsyncpa [#allocation6 + $0x1], 1 }
 0xb26   :  { %1701 = vsyncpa [#allocation8], 1 }
 0xb27   :  { %1703 = vsyncpa [#allocation8 + $0x1], 1 }

</bundles_post_ra>
